<compile_context>
chip_gen: v6e
topology: v6e:2x2x1
jax: 0.10.0
libtpu: 0.0.40
codegen_flags: <defaults>
</compile_context>

<pallas_src>
import functools

import jax
import jax.numpy as jnp
from jax import lax
from jax.experimental import pallas as pl
from jax.experimental.pallas import tpu as pltpu


NUM_BASES = 6   # self.num_bases
TEM_SIZE = 6    # len(self.bases) for input_ks == 3
KS = 3          # input_ks
NB_PAD = 8      # num_bases padded to a full sublane tile


def _dcf_kernel(W, fw_ref, mb_ref, w1_ref, b1_ref, w2_ref, b2_ref,
                bt_ref, coef_ref, bias_ref, o_ref, s_ref, bp_ref):
    # fw_ref:   (Ct, L)  cat(feat, weight) channels on sublanes, L lane-stacked pixels
    # mb_ref:   (1, L)   int32 packed per-tap validity bitmask (bit l = tap l valid)
    # w1_ref:   (Cf, 9*Ct)      3x3 conv weights, columns = (tap-major, cat-channel)
    # b1_ref:   (Cf, 1)
    # w2_ref:   (NB*TS, Cf)     1x1 conv weights
    # b2_ref:   (NB*TS, 1)
    # bt_ref:   (9*NB_PAD, NB*TS) tap-major block-diag bases^T (rows m>=NB are zero)
    # coef_ref: (Cf, Cf*NB_PAD) final 1x1 conv weights in the padded (c*8+m) layout
    # bias_ref: (Cf, 1)
    # o_ref:    (Cf, L)
    # s_ref:    (9*Ct, L)       scratch: all shifted taps (3x3-conv RHS + feat taps)
    # bp_ref:   (9*NB_PAD, L)   scratch: per-pixel dynamic filters, tap-major
    Ct = fw_ref.shape[0]
    Cf = o_ref.shape[0]
    L = fw_ref.shape[1]

    fw = fw_ref[...]                                    # (Ct, L)
    mbits = mb_ref[...]                                 # (1, L) int32

    # --- stage the 9 shifted, zero-padded taps of cat(feat, weight) ----------------
    # One roll + one mask multiply + one aligned full-tile store per tap.
    for ky in range(KS):
        for kx in range(KS):
            dy, dx = ky - 1, kx - 1
            l = ky * KS + kx
            shift = (-(dy * W + dx)) % L
            rolled = fw if shift == 0 else pltpu.roll(fw, shift=shift, axis=1)
            m = jnp.bitwise_and(jnp.right_shift(mbits, l), 1).astype(fw.dtype)
            s_ref[l * Ct:(l + 1) * Ct, :] = rolled * m

    # --- conv_bases[0]: 3x3 conv over cat(feat, weight) as ONE K = 9*Ct matmul ------
    t = jnp.dot(w1_ref[...], s_ref[...], preferred_element_type=jnp.float32)
    t = jnp.tanh(t + b1_ref[...])                       # (Cf, L)

    # --- conv_bases[2]: 1x1 conv + tanh --------------------------------------------
    co = jnp.dot(w2_ref[...], t, preferred_element_type=jnp.float32)
    co = jnp.tanh(co + b2_ref[...])                     # (NB*TS, L)

    # --- einsum('bmkhw,kl->bmlhw') as one tap-major block-diagonal matmul -----------
    # Stored to scratch so the tap loop below only keeps one 8-row slice live.
    bp_ref[...] = jnp.dot(bt_ref[...], co, preferred_element_type=jnp.float32)

    # --- einsum('bmlhw,bclhw->bcmhw'): per-pixel 9-tap contraction (VPU) ------------
    acc = jnp.zeros((Cf, NB_PAD, L), jnp.float32)
    for l in range(KS * KS):
        feat_tap = s_ref[l * Ct:l * Ct + Cf, :]          # (Cf, L)  cheap aligned reload
        bp_l = bp_ref[l * NB_PAD:(l + 1) * NB_PAD, :]    # (8, L)   contiguous 8-row slice
        acc = acc + feat_tap[:, None, :] * bp_l[None, :, :]
    bases_out = acc.reshape(Cf * NB_PAD, L)              # row = c*8 + m (m>=NB rows are 0)

    # --- final 1x1 conv (coef) + bias -----------------------------------------------
    out = jnp.dot(coef_ref[...], bases_out, preferred_element_type=jnp.float32)
    o_ref[...] = (out + bias_ref[...]).astype(o_ref.dtype)


def dcf_forward(feat, wgt, w1, b1, w2, b2, bases_buf, coef, bias):
    """feat: (N, Cf, H, W); wgt: (N, Cw, H, W); w1: (Cf, Cf+Cw, 3, 3); b1: (Cf,);
       w2: (NB*TS, Cf, 1, 1); b2: (NB*TS,); bases_buf: (TS, 9);
       coef: (Cf, Cf*NB, 1, 1); bias: (Cf,)."""
    N, Cf, H, W = feat.shape
    Cw = wgt.shape[1]
    Ct = Cf + Cw
    P = H * W
    NB, TS = NUM_BASES, TEM_SIZE
    L = N * P   # all images lane-stacked in one block (demo-sized; see H-tiling TODO)

    # ---- one-time, tiny parameter/layout repacks (wrapper side) ----
    # 3x3 conv weights: columns tap-major, cat-channel minor -> matches s_ref rows.
    w1_mat = jnp.transpose(w1, (0, 2, 3, 1)).reshape(Cf, KS * KS * Ct)
    w2_mat = w2.reshape(NB * TS, Cf)
    # Tap-major, NB padded to 8: bt[l*8+m, n*TS+k] = (m==n, m<NB) * B[k, l].
    bt_blk = jnp.einsum('mn,kl->lmnk',
                        jnp.eye(NB_PAD, NB, dtype=bases_buf.dtype),
                        bases_buf).reshape(KS * KS * NB_PAD, NB * TS)
    # Final 1x1 conv with columns in the padded (c*8+m) layout (padded cols are zero).
    coef_pad = jnp.pad(coef.reshape(Cf, Cf, NB),
                       ((0, 0), (0, 0), (0, NB_PAD - NB))).reshape(Cf, Cf * NB_PAD)

    # Packed per-tap validity bitmask (bit l of lane p == tap l valid at pixel p).
    hh = jnp.arange(H)[:, None]
    ww = jnp.arange(W)[None, :]
    bits = jnp.zeros((H, W), jnp.int32)
    for ky in range(KS):
        for kx in range(KS):
            dy, dx = ky - 1, kx - 1
            v = ((hh + dy >= 0) & (hh + dy < H) &
                 (ww + dx >= 0) & (ww + dx < W)).astype(jnp.int32)
            bits = bits | (v << (ky * KS + kx))
    mask_bits = jnp.tile(bits.reshape(1, P), (1, N))                     # (1, L)

    # cat(feat, weight) on channels (sublanes), images stacked along the lane axis.
    fw = jnp.concatenate([feat, wgt], axis=1).reshape(N, Ct, P)
    fw = jnp.transpose(fw, (1, 0, 2)).reshape(Ct, L)

    kernel = functools.partial(_dcf_kernel, W)

    out_flat = pl.pallas_call(
        kernel,
        out_shape=jax.ShapeDtypeStruct((Cf, L), feat.dtype),
        grid_spec=pltpu.PrefetchScalarGridSpec(
            num_scalar_prefetch=0,
            grid=(1,),
            in_specs=[
                pl.BlockSpec((Ct, L), lambda g: (0, g)),                   # cat(feat,wgt)
                pl.BlockSpec((1, L), lambda g: (0, g)),                    # tap bitmask
                pl.BlockSpec((Cf, KS * KS * Ct), lambda g: (0, 0)),        # 3x3 conv W
                pl.BlockSpec((Cf, 1), lambda g: (0, 0)),                   # b1
                pl.BlockSpec((NB * TS, Cf), lambda g: (0, 0)),             # 1x1 conv W
                pl.BlockSpec((NB * TS, 1), lambda g: (0, 0)),              # b2
                pl.BlockSpec((KS * KS * NB_PAD, NB * TS), lambda g: (0, 0)),  # bases^T
                pl.BlockSpec((Cf, Cf * NB_PAD), lambda g: (0, 0)),         # coef (padded)
                pl.BlockSpec((Cf, 1), lambda g: (0, 0)),                   # bias
            ],
            out_specs=pl.BlockSpec((Cf, L), lambda g: (0, g)),
            scratch_shapes=[
                pltpu.VMEM((KS * KS * Ct, L), jnp.float32),                # shifted taps
                pltpu.VMEM((KS * KS * NB_PAD, L), jnp.float32),            # dyn. filters
            ],
        ),
        compiler_params=pltpu.CompilerParams(
            dimension_semantics=("parallel",),
            vmem_limit_bytes=32 * 1024 * 1024),
    )(fw, mask_bits, w1_mat, b1[:, None], w2_mat, b2[:, None],
      bt_blk, coef_pad, bias[:, None])

    out = out_flat.reshape(Cf, N, H, W)
    return jnp.transpose(out, (1, 0, 2, 3))


def dcf_reference(feat, wgt, w1, b1, w2, b2, bases_buf, coef, bias):
    """Pure-JAX reference reproducing the PyTorch DCF.forward (drop_rate = 0)."""
    N, Cf, H, W = feat.shape
    NB, TS = NUM_BASES, TEM_SIZE
    hp = lax.Precision.HIGHEST

    x = jnp.concatenate([feat, wgt], axis=1)
    t = lax.conv_general_dilated(x, w1, (1, 1), ((1, 1), (1, 1)),
                                 dimension_numbers=("NCHW", "OIHW", "NCHW"),
                                 precision=hp)
    t = jnp.tanh(t + b1[None, :, None, None])
    co = lax.conv_general_dilated(t, w2, (1, 1), ((0, 0), (0, 0)),
                                  dimension_numbers=("NCHW", "OIHW", "NCHW"),
                                  precision=hp)
    co = jnp.tanh(co + b2[None, :, None, None])                        # (N, NB*TS, H, W)
    co = co.reshape(N, NB, TS, H, W)
    bases = jnp.einsum('bmkhw,kl->bmlhw', co, bases_buf, precision=hp)  # (N, NB, 9, H, W)

    fp = jnp.pad(feat, ((0, 0), (0, 0), (1, 1), (1, 1)))
    x_unf = jnp.stack([fp[:, :, ky:ky + H, kx:kx + W]
                       for ky in range(KS) for kx in range(KS)], axis=2)  # (N,Cf,9,H,W)
    bo = jnp.einsum('bmlhw,bclhw->bcmhw', bases, x_unf, precision=hp)
    bo = bo.reshape(N, Cf * NB, H, W)
    out = jnp.einsum('oc,bchw->bohw', coef.reshape(Cf, Cf * NB), bo,
                     precision=hp) + bias[None, :, None, None]
    return out


if __name__ == "__main__":
    # input_planes = weight_planes = 4, input_ks = 3 -> num_bases = 6, tem_size = 6
    N, C, H, W = 2, 4, 16, 16
    NB, TS = NUM_BASES, TEM_SIZE

    key = jax.random.PRNGKey(0)
    ks = jax.random.split(key, 9)

    feat = jax.random.normal(ks[0], (N, C, H, W), jnp.float32)
    wgt = jax.random.normal(ks[1], (N, C, H, W), jnp.float32)

    # Deterministic parameters.
    w1 = 0.2 * jax.random.normal(ks[2], (C, 2 * C, 3, 3), jnp.float32)      # conv_bases[0]
    b1 = 0.1 * jax.random.normal(ks[3], (C,), jnp.float32)
    w2 = 0.2 * jax.random.normal(ks[4], (NB * TS, C, 1, 1), jnp.float32)    # conv_bases[2]
    b2 = 0.1 * jax.random.normal(ks[5], (NB * TS,), jnp.float32)
    # TODO(synk): stand-in for the (unspecified) Fourier-Bessel bases buffer.
    bases_buf = jax.random.normal(ks[6], (TS, KS * KS), jnp.float32) / 3.0
    coef = 0.3 * jax.random.normal(ks[7], (C, C * NB, 1, 1), jnp.float32)   # self.coef
    bias = 0.05 * jax.random.normal(ks[8], (C,), jnp.float32)               # self.bias

    out = dcf_forward(feat, wgt, w1, b1, w2, b2, bases_buf, coef, bias)
    out = jax.block_until_ready(out)

    ref = dcf_reference(feat, wgt, w1, b1, w2, b2, bases_buf, coef, bias)
    assert out.shape == (N, C, H, W)
    max_err = jnp.max(jnp.abs(out - ref))
    assert jnp.allclose(out, ref, atol=5e-3, rtol=5e-3), f"mismatch vs reference: {max_err}"

    print("KERNEL_OK")
</pallas_src>

<mosaic_0001>
module attributes {stable_mosaic.version = 11 : i64} {
  func.func @_dcf_kernel(%arg0: i32, %arg1: memref<8x512xf32, #tpu.memory_space<vmem>>, %arg2: memref<1x512xi32, #tpu.memory_space<vmem>>, %arg3: memref<4x72xf32, #tpu.memory_space<vmem>>, %arg4: memref<4x1xf32, #tpu.memory_space<vmem>>, %arg5: memref<36x4xf32, #tpu.memory_space<vmem>>, %arg6: memref<36x1xf32, #tpu.memory_space<vmem>>, %arg7: memref<72x36xf32, #tpu.memory_space<vmem>>, %arg8: memref<4x32xf32, #tpu.memory_space<vmem>>, %arg9: memref<4x1xf32, #tpu.memory_space<vmem>>, %arg10: memref<4x512xf32, #tpu.memory_space<vmem>>, %arg11: memref<72x512xf32, #tpu.memory_space<vmem>>, %arg12: memref<72x512xf32, #tpu.memory_space<vmem>>) attributes {dimension_semantics = [#tpu.dimension_semantics<parallel>], iteration_bounds = array<i64: 1>, scalar_prefetch = 0 : i64, scratch_operands = 2 : i64, tpu.core_type = #tpu.core_type<tc>, window_params = [{transform_indices = @transform_0, window_bounds = array<i64: 8, 512>}, {transform_indices = @transform_1, window_bounds = array<i64: 1, 512>}, {pipeline_mode = #tpu.pipeline_mode<synchronous>, transform_indices = @transform_2, window_bounds = array<i64: 4, 72>}, {pipeline_mode = #tpu.pipeline_mode<synchronous>, transform_indices = @transform_3, window_bounds = array<i64: 4, 1>}, {pipeline_mode = #tpu.pipeline_mode<synchronous>, transform_indices = @transform_4, window_bounds = array<i64: 36, 4>}, {pipeline_mode = #tpu.pipeline_mode<synchronous>, transform_indices = @transform_5, window_bounds = array<i64: 36, 1>}, {pipeline_mode = #tpu.pipeline_mode<synchronous>, transform_indices = @transform_6, window_bounds = array<i64: 72, 36>}, {pipeline_mode = #tpu.pipeline_mode<synchronous>, transform_indices = @transform_7, window_bounds = array<i64: 4, 32>}, {pipeline_mode = #tpu.pipeline_mode<synchronous>, transform_indices = @transform_8, window_bounds = array<i64: 4, 1>}, {transform_indices = @transform_9, window_bounds = array<i64: 4, 512>}]} {
    %c0 = arith.constant 0 : index
    %c0_0 = arith.constant 0 : index
    %0 = vector.load %arg1[%c0, %c0_0] : memref<8x512xf32, #tpu.memory_space<vmem>>, vector<8x512xf32>
    %c0_1 = arith.constant 0 : index
    %c0_2 = arith.constant 0 : index
    %1 = vector.load %arg2[%c0_1, %c0_2] : memref<1x512xi32, #tpu.memory_space<vmem>>, vector<1x512xi32>
    %c17_i32 = arith.constant 17 : i32
    %2 = tpu.dynamic_rotate %0 by %c17_i32 dim 1 : vector<8x512xf32>, i32 -> vector<8x512xf32>
    %c0_i32 = arith.constant 0 : i32
    %3 = vector.broadcast %c0_i32 : i32 to vector<1x512xi32>
    %4 = arith.shrsi %1, %3 : vector<1x512xi32>
    %c1_i32 = arith.constant 1 : i32
    %5 = vector.broadcast %c1_i32 : i32 to vector<1x512xi32>
    %6 = arith.andi %4, %5 : vector<1x512xi32>
    %7 = arith.sitofp %6 : vector<1x512xi32> to vector<1x512xf32>
    %8 = vector.broadcast %7 : vector<1x512xf32> to vector<8x512xf32>
    %9 = arith.mulf %2, %8 : vector<8x512xf32>
    %c0_3 = arith.constant 0 : index
    %c0_4 = arith.constant 0 : index
    %10 = vector.load %arg11[%c0_3, %c0_4] : memref<72x512xf32, #tpu.memory_space<vmem>>, vector<8x512xf32>
    tpu.vector_store %arg11[%c0_3, %c0_4], %9 {strides = array<i32>} : memref<72x512xf32, #tpu.memory_space<vmem>>, vector<8x512xf32>,
    %c16_i32 = arith.constant 16 : i32
    %11 = tpu.dynamic_rotate %0 by %c16_i32 dim 1 : vector<8x512xf32>, i32 -> vector<8x512xf32>
    %c1_i32_5 = arith.constant 1 : i32
    %12 = vector.broadcast %c1_i32_5 : i32 to vector<1x512xi32>
    %13 = arith.shrsi %1, %12 : vector<1x512xi32>
    %c1_i32_6 = arith.constant 1 : i32
    %14 = vector.broadcast %c1_i32_6 : i32 to vector<1x512xi32>
    %15 = arith.andi %13, %14 : vector<1x512xi32>
    %16 = arith.sitofp %15 : vector<1x512xi32> to vector<1x512xf32>
    %17 = vector.broadcast %16 : vector<1x512xf32> to vector<8x512xf32>
    %18 = arith.mulf %11, %17 : vector<8x512xf32>
    %c8 = arith.constant 8 : index
    %c0_7 = arith.constant 0 : index
    %19 = vector.load %arg11[%c8, %c0_7] : memref<72x512xf32, #tpu.memory_space<vmem>>, vector<8x512xf32>
    tpu.vector_store %arg11[%c8, %c0_7], %18 {strides = array<i32>} : memref<72x512xf32, #tpu.memory_space<vmem>>, vector<8x512xf32>,
    %c15_i32 = arith.constant 15 : i32
    %20 = tpu.dynamic_rotate %0 by %c15_i32 dim 1 : vector<8x512xf32>, i32 -> vector<8x512xf32>
    %c2_i32 = arith.constant 2 : i32
    %21 = vector.broadcast %c2_i32 : i32 to vector<1x512xi32>
    %22 = arith.shrsi %1, %21 : vector<1x512xi32>
    %c1_i32_8 = arith.constant 1 : i32
    %23 = vector.broadcast %c1_i32_8 : i32 to vector<1x512xi32>
    %24 = arith.andi %22, %23 : vector<1x512xi32>
    %25 = arith.sitofp %24 : vector<1x512xi32> to vector<1x512xf32>
    %26 = vector.broadcast %25 : vector<1x512xf32> to vector<8x512xf32>
    %27 = arith.mulf %20, %26 : vector<8x512xf32>
    %c16 = arith.constant 16 : index
    %c0_9 = arith.constant 0 : index
    %28 = vector.load %arg11[%c16, %c0_9] : memref<72x512xf32, #tpu.memory_space<vmem>>, vector<8x512xf32>
    tpu.vector_store %arg11[%c16, %c0_9], %27 {strides = array<i32>} : memref<72x512xf32, #tpu.memory_space<vmem>>, vector<8x512xf32>,
    %c1_i32_10 = arith.constant 1 : i32
    %29 = tpu.dynamic_rotate %0 by %c1_i32_10 dim 1 : vector<8x512xf32>, i32 -> vector<8x512xf32>
    %c3_i32 = arith.constant 3 : i32
    %30 = vector.broadcast %c3_i32 : i32 to vector<1x512xi32>
    %31 = arith.shrsi %1, %30 : vector<1x512xi32>
    %c1_i32_11 = arith.constant 1 : i32
    %32 = vector.broadcast %c1_i32_11 : i32 to vector<1x512xi32>
    %33 = arith.andi %31, %32 : vector<1x512xi32>
    %34 = arith.sitofp %33 : vector<1x512xi32> to vector<1x512xf32>
    %35 = vector.broadcast %34 : vector<1x512xf32> to vector<8x512xf32>
    %36 = arith.mulf %29, %35 : vector<8x512xf32>
    %c24 = arith.constant 24 : index
    %c0_12 = arith.constant 0 : index
    %37 = vector.load %arg11[%c24, %c0_12] : memref<72x512xf32, #tpu.memory_space<vmem>>, vector<8x512xf32>
    tpu.vector_store %arg11[%c24, %c0_12], %36 {strides = array<i32>} : memref<72x512xf32, #tpu.memory_space<vmem>>, vector<8x512xf32>,
    %c4_i32 = arith.constant 4 : i32
    %38 = vector.broadcast %c4_i32 : i32 to vector<1x512xi32>
    %39 = arith.shrsi %1, %38 : vector<1x512xi32>
    %c1_i32_13 = arith.constant 1 : i32
    %40 = vector.broadcast %c1_i32_13 : i32 to vector<1x512xi32>
    %41 = arith.andi %39, %40 : vector<1x512xi32>
    %42 = arith.sitofp %41 : vector<1x512xi32> to vector<1x512xf32>
    %43 = vector.broadcast %42 : vector<1x512xf32> to vector<8x512xf32>
    %44 = arith.mulf %0, %43 : vector<8x512xf32>
    %c32 = arith.constant 32 : index
    %c0_14 = arith.constant 0 : index
    %45 = vector.load %arg11[%c32, %c0_14] : memref<72x512xf32, #tpu.memory_space<vmem>>, vector<8x512xf32>
    tpu.vector_store %arg11[%c32, %c0_14], %44 {strides = array<i32>} : memref<72x512xf32, #tpu.memory_space<vmem>>, vector<8x512xf32>,
    %c511_i32 = arith.constant 511 : i32
    %46 = tpu.dynamic_rotate %0 by %c511_i32 dim 1 : vector<8x512xf32>, i32 -> vector<8x512xf32>
    %c5_i32 = arith.constant 5 : i32
    %47 = vector.broadcast %c5_i32 : i32 to vector<1x512xi32>
    %48 = arith.shrsi %1, %47 : vector<1x512xi32>
    %c1_i32_15 = arith.constant 1 : i32
    %49 = vector.broadcast %c1_i32_15 : i32 to vector<1x512xi32>
    %50 = arith.andi %48, %49 : vector<1x512xi32>
    %51 = arith.sitofp %50 : vector<1x512xi32> to vector<1x512xf32>
    %52 = vector.broadcast %51 : vector<1x512xf32> to vector<8x512xf32>
    %53 = arith.mulf %46, %52 : vector<8x512xf32>
    %c40 = arith.constant 40 : index
    %c0_16 = arith.constant 0 : index
    %54 = vector.load %arg11[%c40, %c0_16] : memref<72x512xf32, #tpu.memory_space<vmem>>, vector<8x512xf32>
    tpu.vector_store %arg11[%c40, %c0_16], %53 {strides = array<i32>} : memref<72x512xf32, #tpu.memory_space<vmem>>, vector<8x512xf32>,
    %c497_i32 = arith.constant 497 : i32
    %55 = tpu.dynamic_rotate %0 by %c497_i32 dim 1 : vector<8x512xf32>, i32 -> vector<8x512xf32>
    %c6_i32 = arith.constant 6 : i32
    %56 = vector.broadcast %c6_i32 : i32 to vector<1x512xi32>
    %57 = arith.shrsi %1, %56 : vector<1x512xi32>
    %c1_i32_17 = arith.constant 1 : i32
    %58 = vector.broadcast %c1_i32_17 : i32 to vector<1x512xi32>
    %59 = arith.andi %57, %58 : vector<1x512xi32>
    %60 = arith.sitofp %59 : vector<1x512xi32> to vector<1x512xf32>
    %61 = vector.broadcast %60 : vector<1x512xf32> to vector<8x512xf32>
    %62 = arith.mulf %55, %61 : vector<8x512xf32>
    %c48 = arith.constant 48 : index
    %c0_18 = arith.constant 0 : index
    %63 = vector.load %arg11[%c48, %c0_18] : memref<72x512xf32, #tpu.memory_space<vmem>>, vector<8x512xf32>
    tpu.vector_store %arg11[%c48, %c0_18], %62 {strides = array<i32>} : memref<72x512xf32, #tpu.memory_space<vmem>>, vector<8x512xf32>,
    %c496_i32 = arith.constant 496 : i32
    %64 = tpu.dynamic_rotate %0 by %c496_i32 dim 1 : vector<8x512xf32>, i32 -> vector<8x512xf32>
    %c7_i32 = arith.constant 7 : i32
    %65 = vector.broadcast %c7_i32 : i32 to vector<1x512xi32>
    %66 = arith.shrsi %1, %65 : vector<1x512xi32>
    %c1_i32_19 = arith.constant 1 : i32
    %67 = vector.broadcast %c1_i32_19 : i32 to vector<1x512xi32>
    %68 = arith.andi %66, %67 : vector<1x512xi32>
    %69 = arith.sitofp %68 : vector<1x512xi32> to vector<1x512xf32>
    %70 = vector.broadcast %69 : vector<1x512xf32> to vector<8x512xf32>
    %71 = arith.mulf %64, %70 : vector<8x512xf32>
    %c56 = arith.constant 56 : index
    %c0_20 = arith.constant 0 : index
    %72 = vector.load %arg11[%c56, %c0_20] : memref<72x512xf32, #tpu.memory_space<vmem>>, vector<8x512xf32>
    tpu.vector_store %arg11[%c56, %c0_20], %71 {strides = array<i32>} : memref<72x512xf32, #tpu.memory_space<vmem>>, vector<8x512xf32>,
    %c495_i32 = arith.constant 495 : i32
    %73 = tpu.dynamic_rotate %0 by %c495_i32 dim 1 : vector<8x512xf32>, i32 -> vector<8x512xf32>
    %c8_i32 = arith.constant 8 : i32
    %74 = vector.broadcast %c8_i32 : i32 to vector<1x512xi32>
    %75 = arith.shrsi %1, %74 : vector<1x512xi32>
    %c1_i32_21 = arith.constant 1 : i32
    %76 = vector.broadcast %c1_i32_21 : i32 to vector<1x512xi32>
    %77 = arith.andi %75, %76 : vector<1x512xi32>
    %78 = arith.sitofp %77 : vector<1x512xi32> to vector<1x512xf32>
    %79 = vector.broadcast %78 : vector<1x512xf32> to vector<8x512xf32>
    %80 = arith.mulf %73, %79 : vector<8x512xf32>
    %c64 = arith.constant 64 : index
    %c0_22 = arith.constant 0 : index
    %81 = vector.load %arg11[%c64, %c0_22] : memref<72x512xf32, #tpu.memory_space<vmem>>, vector<8x512xf32>
    tpu.vector_store %arg11[%c64, %c0_22], %80 {strides = array<i32>} : memref<72x512xf32, #tpu.memory_space<vmem>>, vector<8x512xf32>,
    %c0_23 = arith.constant 0 : index
    %c0_24 = arith.constant 0 : index
    %82 = vector.load %arg3[%c0_23, %c0_24] : memref<4x72xf32, #tpu.memory_space<vmem>>, vector<4x72xf32>
    %c0_25 = arith.constant 0 : index
    %c0_26 = arith.constant 0 : index
    %83 = vector.load %arg11[%c0_25, %c0_26] : memref<72x512xf32, #tpu.memory_space<vmem>>, vector<72x512xf32>
    %cst = arith.constant dense<0.000000e+00> : vector<4x512xf32>
    %84 = tpu.matmul %82, %83, %cst {dimension_numbers = #tpu.dot_dimension_numbers<[1], [0], [0], [1], [0, 0, 1, 1], [], []>} : vector<4x72xf32>, vector<72x512xf32>, vector<4x512xf32> -> vector<4x512xf32>
    %c0_27 = arith.constant 0 : index
    %c0_28 = arith.constant 0 : index
    %85 = vector.load %arg4[%c0_27, %c0_28] : memref<4x1xf32, #tpu.memory_space<vmem>>, vector<4x1xf32>
    %86 = vector.broadcast %85 : vector<4x1xf32> to vector<4x512xf32>
    %87 = arith.addf %84, %86 : vector<4x512xf32>
    %88 = math.tanh %87 : vector<4x512xf32>
    %c0_29 = arith.constant 0 : index
    %c0_30 = arith.constant 0 : index
    %89 = vector.load %arg5[%c0_29, %c0_30] : memref<36x4xf32, #tpu.memory_space<vmem>>, vector<36x4xf32>
    %cst_31 = arith.constant dense<0.000000e+00> : vector<36x512xf32>
    %90 = tpu.matmul %89, %88, %cst_31 {dimension_numbers = #tpu.dot_dimension_numbers<[1], [0], [0], [1], [0, 0, 1, 1], [], []>} : vector<36x4xf32>, vector<4x512xf32>, vector<36x512xf32> -> vector<36x512xf32>
    %c0_32 = arith.constant 0 : index
    %c0_33 = arith.constant 0 : index
    %91 = vector.load %arg6[%c0_32, %c0_33] : memref<36x1xf32, #tpu.memory_space<vmem>>, vector<36x1xf32>
    %92 = vector.broadcast %91 : vector<36x1xf32> to vector<36x512xf32>
    %93 = arith.addf %90, %92 : vector<36x512xf32>
    %94 = math.tanh %93 : vector<36x512xf32>
    %c0_34 = arith.constant 0 : index
    %c0_35 = arith.constant 0 : index
    %95 = vector.load %arg7[%c0_34, %c0_35] : memref<72x36xf32, #tpu.memory_space<vmem>>, vector<72x36xf32>
    %cst_36 = arith.constant dense<0.000000e+00> : vector<72x512xf32>
    %96 = tpu.matmul %95, %94, %cst_36 {dimension_numbers = #tpu.dot_dimension_numbers<[1], [0], [0], [1], [0, 0, 1, 1], [], []>} : vector<72x36xf32>, vector<36x512xf32>, vector<72x512xf32> -> vector<72x512xf32>
    %c0_37 = arith.constant 0 : index
    %c0_38 = arith.constant 0 : index
    %97 = vector.load %arg12[%c0_37, %c0_38] : memref<72x512xf32, #tpu.memory_space<vmem>>, vector<72x512xf32>
    tpu.vector_store %arg12[%c0_37, %c0_38], %96 {strides = array<i32>} : memref<72x512xf32, #tpu.memory_space<vmem>>, vector<72x512xf32>,
    %cst_39 = arith.constant 0.000000e+00 : f32
    %98 = vector.broadcast %cst_39 : f32 to vector<4x8x512xf32>
    %c0_40 = arith.constant 0 : index
    %c0_41 = arith.constant 0 : index
    %99 = vector.load %arg11[%c0_40, %c0_41] : memref<72x512xf32, #tpu.memory_space<vmem>>, vector<4x512xf32>
    %c0_42 = arith.constant 0 : index
    %c0_43 = arith.constant 0 : index
    %100 = vector.load %arg12[%c0_42, %c0_43] : memref<72x512xf32, #tpu.memory_space<vmem>>, vector<8x512xf32>
    %101 = vector.shape_cast %99 : vector<4x512xf32> to vector<4x1x512xf32>
    %102 = vector.shape_cast %100 : vector<8x512xf32> to vector<1x8x512xf32>
    %103 = vector.broadcast %101 : vector<4x1x512xf32> to vector<4x8x512xf32>
    %104 = vector.broadcast %102 : vector<1x8x512xf32> to vector<4x8x512xf32>
    %105 = arith.mulf %103, %104 : vector<4x8x512xf32>
    %106 = arith.addf %98, %105 : vector<4x8x512xf32>
    %c8_44 = arith.constant 8 : index
    %c0_45 = arith.constant 0 : index
    %107 = vector.load %arg11[%c8_44, %c0_45] : memref<72x512xf32, #tpu.memory_space<vmem>>, vector<4x512xf32>
    %c8_46 = arith.constant 8 : index
    %c0_47 = arith.constant 0 : index
    %108 = vector.load %arg12[%c8_46, %c0_47] : memref<72x512xf32, #tpu.memory_space<vmem>>, vector<8x512xf32>
    %109 = vector.shape_cast %107 : vector<4x512xf32> to vector<4x1x512xf32>
    %110 = vector.shape_cast %108 : vector<8x512xf32> to vector<1x8x512xf32>
    %111 = vector.broadcast %109 : vector<4x1x512xf32> to vector<4x8x512xf32>
    %112 = vector.broadcast %110 : vector<1x8x512xf32> to vector<4x8x512xf32>
    %113 = arith.mulf %111, %112 : vector<4x8x512xf32>
    %114 = arith.addf %106, %113 : vector<4x8x512xf32>
    %c16_48 = arith.constant 16 : index
    %c0_49 = arith.constant 0 : index
    %115 = vector.load %arg11[%c16_48, %c0_49] : memref<72x512xf32, #tpu.memory_space<vmem>>, vector<4x512xf32>
    %c16_50 = arith.constant 16 : index
    %c0_51 = arith.constant 0 : index
    %116 = vector.load %arg12[%c16_50, %c0_51] : memref<72x512xf32, #tpu.memory_space<vmem>>, vector<8x512xf32>
    %117 = vector.shape_cast %115 : vector<4x512xf32> to vector<4x1x512xf32>
    %118 = vector.shape_cast %116 : vector<8x512xf32> to vector<1x8x512xf32>
    %119 = vector.broadcast %117 : vector<4x1x512xf32> to vector<4x8x512xf32>
    %120 = vector.broadcast %118 : vector<1x8x512xf32> to vector<4x8x512xf32>
    %121 = arith.mulf %119, %120 : vector<4x8x512xf32>
    %122 = arith.addf %114, %121 : vector<4x8x512xf32>
    %c24_52 = arith.constant 24 : index
    %c0_53 = arith.constant 0 : index
    %123 = vector.load %arg11[%c24_52, %c0_53] : memref<72x512xf32, #tpu.memory_space<vmem>>, vector<4x512xf32>
    %c24_54 = arith.constant 24 : index
    %c0_55 = arith.constant 0 : index
    %124 = vector.load %arg12[%c24_54, %c0_55] : memref<72x512xf32, #tpu.memory_space<vmem>>, vector<8x512xf32>
    %125 = vector.shape_cast %123 : vector<4x512xf32> to vector<4x1x512xf32>
    %126 = vector.shape_cast %124 : vector<8x512xf32> to vector<1x8x512xf32>
    %127 = vector.broadcast %125 : vector<4x1x512xf32> to vector<4x8x512xf32>
    %128 = vector.broadcast %126 : vector<1x8x512xf32> to vector<4x8x512xf32>
    %129 = arith.mulf %127, %128 : vector<4x8x512xf32>
    %130 = arith.addf %122, %129 : vector<4x8x512xf32>
    %c32_56 = arith.constant 32 : index
    %c0_57 = arith.constant 0 : index
    %131 = vector.load %arg11[%c32_56, %c0_57] : memref<72x512xf32, #tpu.memory_space<vmem>>, vector<4x512xf32>
    %c32_58 = arith.constant 32 : index
    %c0_59 = arith.constant 0 : index
    %132 = vector.load %arg12[%c32_58, %c0_59] : memref<72x512xf32, #tpu.memory_space<vmem>>, vector<8x512xf32>
    %133 = vector.shape_cast %131 : vector<4x512xf32> to vector<4x1x512xf32>
    %134 = vector.shape_cast %132 : vector<8x512xf32> to vector<1x8x512xf32>
    %135 = vector.broadcast %133 : vector<4x1x512xf32> to vector<4x8x512xf32>
    %136 = vector.broadcast %134 : vector<1x8x512xf32> to vector<4x8x512xf32>
    %137 = arith.mulf %135, %136 : vector<4x8x512xf32>
    %138 = arith.addf %130, %137 : vector<4x8x512xf32>
    %c40_60 = arith.constant 40 : index
    %c0_61 = arith.constant 0 : index
    %139 = vector.load %arg11[%c40_60, %c0_61] : memref<72x512xf32, #tpu.memory_space<vmem>>, vector<4x512xf32>
    %c40_62 = arith.constant 40 : index
    %c0_63 = arith.constant 0 : index
    %140 = vector.load %arg12[%c40_62, %c0_63] : memref<72x512xf32, #tpu.memory_space<vmem>>, vector<8x512xf32>
    %141 = vector.shape_cast %139 : vector<4x512xf32> to vector<4x1x512xf32>
    %142 = vector.shape_cast %140 : vector<8x512xf32> to vector<1x8x512xf32>
    %143 = vector.broadcast %141 : vector<4x1x512xf32> to vector<4x8x512xf32>
    %144 = vector.broadcast %142 : vector<1x8x512xf32> to vector<4x8x512xf32>
    %145 = arith.mulf %143, %144 : vector<4x8x512xf32>
    %146 = arith.addf %138, %145 : vector<4x8x512xf32>
    %c48_64 = arith.constant 48 : index
    %c0_65 = arith.constant 0 : index
    %147 = vector.load %arg11[%c48_64, %c0_65] : memref<72x512xf32, #tpu.memory_space<vmem>>, vector<4x512xf32>
    %c48_66 = arith.constant 48 : index
    %c0_67 = arith.constant 0 : index
    %148 = vector.load %arg12[%c48_66, %c0_67] : memref<72x512xf32, #tpu.memory_space<vmem>>, vector<8x512xf32>
    %149 = vector.shape_cast %147 : vector<4x512xf32> to vector<4x1x512xf32>
    %150 = vector.shape_cast %148 : vector<8x512xf32> to vector<1x8x512xf32>
    %151 = vector.broadcast %149 : vector<4x1x512xf32> to vector<4x8x512xf32>
    %152 = vector.broadcast %150 : vector<1x8x512xf32> to vector<4x8x512xf32>
    %153 = arith.mulf %151, %152 : vector<4x8x512xf32>
    %154 = arith.addf %146, %153 : vector<4x8x512xf32>
    %c56_68 = arith.constant 56 : index
    %c0_69 = arith.constant 0 : index
    %155 = vector.load %arg11[%c56_68, %c0_69] : memref<72x512xf32, #tpu.memory_space<vmem>>, vector<4x512xf32>
    %c56_70 = arith.constant 56 : index
    %c0_71 = arith.constant 0 : index
    %156 = vector.load %arg12[%c56_70, %c0_71] : memref<72x512xf32, #tpu.memory_space<vmem>>, vector<8x512xf32>
    %157 = vector.shape_cast %155 : vector<4x512xf32> to vector<4x1x512xf32>
    %158 = vector.shape_cast %156 : vector<8x512xf32> to vector<1x8x512xf32>
    %159 = vector.broadcast %157 : vector<4x1x512xf32> to vector<4x8x512xf32>
    %160 = vector.broadcast %158 : vector<1x8x512xf32> to vector<4x8x512xf32>
    %161 = arith.mulf %159, %160 : vector<4x8x512xf32>
    %162 = arith.addf %154, %161 : vector<4x8x512xf32>
    %c64_72 = arith.constant 64 : index
    %c0_73 = arith.constant 0 : index
    %163 = vector.load %arg11[%c64_72, %c0_73] : memref<72x512xf32, #tpu.memory_space<vmem>>, vector<4x512xf32>
    %c64_74 = arith.constant 64 : index
    %c0_75 = arith.constant 0 : index
    %164 = vector.load %arg12[%c64_74, %c0_75] : memref<72x512xf32, #tpu.memory_space<vmem>>, vector<8x512xf32>
    %165 = vector.shape_cast %163 : vector<4x512xf32> to vector<4x1x512xf32>
    %166 = vector.shape_cast %164 : vector<8x512xf32> to vector<1x8x512xf32>
    %167 = vector.broadcast %165 : vector<4x1x512xf32> to vector<4x8x512xf32>
    %168 = vector.broadcast %166 : vector<1x8x512xf32> to vector<4x8x512xf32>
    %169 = arith.mulf %167, %168 : vector<4x8x512xf32>
    %170 = arith.addf %162, %169 : vector<4x8x512xf32>
    %171 = vector.shape_cast %170 : vector<4x8x512xf32> to vector<32x512xf32>
    %c0_76 = arith.constant 0 : index
    %c0_77 = arith.constant 0 : index
    %172 = vector.load %arg8[%c0_76, %c0_77] : memref<4x32xf32, #tpu.memory_space<vmem>>, vector<4x32xf32>
    %cst_78 = arith.constant dense<0.000000e+00> : vector<4x512xf32>
    %173 = tpu.matmul %172, %171, %cst_78 {dimension_numbers = #tpu.dot_dimension_numbers<[1], [0], [0], [1], [0, 0, 1, 1], [], []>} : vector<4x32xf32>, vector<32x512xf32>, vector<4x512xf32> -> vector<4x512xf32>
    %c0_79 = arith.constant 0 : index
    %c0_80 = arith.constant 0 : index
    %174 = vector.load %arg9[%c0_79, %c0_80] : memref<4x1xf32, #tpu.memory_space<vmem>>, vector<4x1xf32>
    %175 = vector.broadcast %174 : vector<4x1xf32> to vector<4x512xf32>
    %176 = arith.addf %173, %175 : vector<4x512xf32>
    %c0_81 = arith.constant 0 : index
    %c0_82 = arith.constant 0 : index
    %177 = vector.load %arg10[%c0_81, %c0_82] : memref<4x512xf32, #tpu.memory_space<vmem>>, vector<4x512xf32>
    tpu.vector_store %arg10[%c0_81, %c0_82], %176 {strides = array<i32>} : memref<4x512xf32, #tpu.memory_space<vmem>>, vector<4x512xf32>,
    return
  }
  func.func @transform_0(%arg0: i32) -> (i32, i32) {
    %c0_i32 = arith.constant 0 : i32
    %c0_i32_0 = arith.constant 0 : i32
    return %c0_i32, %arg0 : i32, i32
  }
  func.func @transform_1(%arg0: i32) -> (i32, i32) {
    %c0_i32 = arith.constant 0 : i32
    %c0_i32_0 = arith.constant 0 : i32
    return %c0_i32, %arg0 : i32, i32
  }
  func.func @transform_2(%arg0: i32) -> (i32, i32) {
    %c0_i32 = arith.constant 0 : i32
    %c0_i32_0 = arith.constant 0 : i32
    %c0_i32_1 = arith.constant 0 : i32
    return %c0_i32, %c0_i32_0 : i32, i32
  }
  func.func @transform_3(%arg0: i32) -> (i32, i32) {
    %c0_i32 = arith.constant 0 : i32
    %c0_i32_0 = arith.constant 0 : i32
    %c0_i32_1 = arith.constant 0 : i32
    return %c0_i32, %c0_i32_0 : i32, i32
  }
  func.func @transform_4(%arg0: i32) -> (i32, i32) {
    %c0_i32 = arith.constant 0 : i32
    %c0_i32_0 = arith.constant 0 : i32
    %c0_i32_1 = arith.constant 0 : i32
    return %c0_i32, %c0_i32_0 : i32, i32
  }
  func.func @transform_5(%arg0: i32) -> (i32, i32) {
    %c0_i32 = arith.constant 0 : i32
    %c0_i32_0 = arith.constant 0 : i32
    %c0_i32_1 = arith.constant 0 : i32
    return %c0_i32, %c0_i32_0 : i32, i32
  }
  func.func @transform_6(%arg0: i32) -> (i32, i32) {
    %c0_i32 = arith.constant 0 : i32
    %c0_i32_0 = arith.constant 0 : i32
    %c0_i32_1 = arith.constant 0 : i32
    return %c0_i32, %c0_i32_0 : i32, i32
  }
  func.func @transform_7(%arg0: i32) -> (i32, i32) {
    %c0_i32 = arith.constant 0 : i32
    %c0_i32_0 = arith.constant 0 : i32
    %c0_i32_1 = arith.constant 0 : i32
    return %c0_i32, %c0_i32_0 : i32, i32
  }
  func.func @transform_8(%arg0: i32) -> (i32, i32) {
    %c0_i32 = arith.constant 0 : i32
    %c0_i32_0 = arith.constant 0 : i32
    %c0_i32_1 = arith.constant 0 : i32
    return %c0_i32, %c0_i32_0 : i32, i32
  }
  func.func @transform_9(%arg0: i32) -> (i32, i32) {
    %c0_i32 = arith.constant 0 : i32
    %c0_i32_0 = arith.constant 0 : i32
    return %c0_i32, %arg0 : i32, i32
  }
}

</mosaic_0001>

<bundles_post_ra>
// kernel: tpu_custom_call.1
= control target key start
LH: loop header
LB: loop body
LE: loop exit
PB: predicated region body
PF: predicated region fallthrough
CT: control target
= control target key end

     0   :  { %s2954_s13 = smov 111   ;;  %s4177_s0 = inlined_call_operand.vmem [shape: f32[8,512], index: 0, kind: input, shape index: {}]   ;;  %s4178_s1 = inlined_call_operand.vmem [shape: s32[1,512], index: 1, kind: input, shape index: {}]   ;;  %s4179_s2 = inlined_call_operand.vmem [shape: f32[4,72], index: 2, kind: input, shape index: {}]   ;;  %s4180_s3 = inlined_call_operand.vmem [shape: f32[4,1], index: 3, kind: input, shape index: {}]   ;;  %s4181_s4 = inlined_call_operand.vmem [shape: f32[36,4], index: 4, kind: input, shape index: {}]   ;;  %s4182_s5 = inlined_call_operand.vmem [shape: f32[36,1], index: 5, kind: input, shape index: {}]   ;;  %s4183_s6 = inlined_call_operand.vmem [shape: f32[72,36], index: 6, kind: input, shape index: {}]   ;;  %s4184_s7 = inlined_call_operand.vmem [shape: f32[4,32], index: 7, kind: input, shape index: {}]   ;;  %s4185_s8 = inlined_call_operand.vmem [shape: f32[4,1], index: 8, kind: input, shape index: {}]   ;;  %s4186_s9 = inlined_call_operand.hbm [shape: f32[4,512], index: 9, kind: output, shape index: {}]  }
   0x1   :  { %v3019_v0 = vld [vmem:[%s4177_s0 + $0x10] sm:$0xff]  ;;  %v3024_v1 = vld [vmem:[%s4177_s0] sm:$0xff]  ;;  %v3031_v2 = vld [vmem:[%s4177_s0 + $0x18] sm:$0xff] }
   0x2   :  { %390 = vrot.lane.b32.xlu1 %v3019_v0, %s2954_s13  ;;  %386 = vrot.lane.b32.xlu0 %v3024_v1, %s2954_s13  ;;  %v34_v3 = vld [vmem:[%s4177_s0 + $0x8] sm:$0xff] }
   0x3   :  { %14 = vsyncpa [#allocation5], 0  ;;  %s2955_s18 = smov 112   ;;  %v46_v4 = vlaneseq  ;;  %v3041_v5 = vld [vmem:[%s4178_s1] sm:$0xf]  ;;  %s2956_s0 = smov 113  }
   0x4   :  { %v219_v6 = vshra.s32 %v3041_v5, 4  ;;  %s2957_s1 = smov 127   ;;  %s2958_s21 = smov 1   ;;  %v2961_v22 = vmov 0.0   ;;  %v2962_v23 = vmov 0   ;;  %v631_v25 = vld [vmem:[%s4182_s5 + $0x10] sm:$0xff] }
   0x5   :  { %v3047_v7 = vshrl.u32 %v46_v4, 7  ;;  %s2959_s22 = smov 15   ;;  %s2960_s23 = smov 16   ;;  %542 = vmatprep.mubr.f32.mxu0 %v2961_v22  ;;  %613 = vmatprep.mubr.f32.mxu1 %v2961_v22  ;;  %v468_v24 = vld [vmem:[%s4180_s3] sm:$0xf]  ;;  %v399_v27 = vshra.s32 %v3041_v5, 8 }
   0x6   :  { %392 = vrot.lane.b32.xlu1 %v3031_v2, %s2954_s13  ;;  %388 = vrot.lane.b32.xlu0 %v34_v3, %s2954_s13  ;;  %v220_v8 = vand.u32 1, %v219_v6  ;;  %s2963_s24 = smov 17   ;;  %v629_v26 = vld [vmem:[%s4182_s5] sm:$0xff]  ;;  %v354_v28 = vshra.s32 %v3041_v5, 7  ;;  %v3112_v31 = vand.u32 127, %v46_v4  ;;  %v309_v36 = vshra.s32 %v3041_v5, 6 }
   0x7   :  { %v3051_v9 = vsub.s32 0, %v3047_v7  ;;  %v3054_v10 = vsub.s32 1, %v3047_v7  ;;  %v3057_v12 = vsub.s32 3, %v3047_v7  ;;  %v3060_v13 = vsub.s32 2, %v3047_v7  ;;  %2872 = vset.pattern.permute.xlu0 %v2962_v23  ;;  %2873 = vset.pattern.permute.xlu1 %v2962_v23 }
   0x8   :  { %v221_v11 = vcvt.s32.f32 %v220_v8  ;;  %v400_v29 = vand.u32 1, %v399_v27  ;;  %v355_v30 = vand.u32 1, %v354_v28  ;;  %vm394_vm0 = vcmp.lt.s32.totalorder %v3112_v31, 111 }
   0x9   :  { %vm349_vm1 = vcmp.lt.s32.totalorder %v3112_v31, 112  ;;  %v310_v44 = vand.u32 1, %v309_v36  ;;  %v264_v57 = vshra.s32 %v3041_v5, 5  ;;  %vm304_vm2 = vcmp.lt.s32.totalorder %v3112_v31, 113 }
   0xa   :  { %343 = vrot.lane.b32.xlu1 %v34_v3, %s2955_s18  ;;  %341 = vrot.lane.b32.xlu0 %v3024_v1, %s2955_s18  ;;  %v230_v14 = vrot.slane %v221_v11, %v3054_v10  ;;  %v226_v15 = vrot.slane %v221_v11, %v3051_v9  ;;  %v238_v16 = vrot.slane %v221_v11, %v3057_v12  ;;  %v401_v32 = vcvt.s32.f32 %v400_v29 }
   0xb   :  { %v234_v19 = vrot.slane %v221_v11, %v3060_v13  ;;  %v356_v35 = vcvt.s32.f32 %v355_v30  ;;  %v311_v56 = vcvt.s32.f32 %v310_v44  ;;  %v187_v23 = vshra.s32 %v3041_v5, 3 }
   0xc   :  { %v3067_v17 = vmul.f32 %v230_v14, %v34_v3  ;;  %v3070_v18 = vmul.f32 %v226_v15, %v3024_v1  ;;  %v3076_v20 = vmul.f32 %v238_v16, %v3031_v2  ;;  %v414_v37 = vrot.slane %v401_v32, %v3060_v13 }
   0xd   :  { %v3079_v21 = vmul.f32 %v234_v19, %v3019_v0  ;;  %v418_v38 = vrot.slane %v401_v32, %v3057_v12  ;;  %v406_v39 = vrot.slane %v401_v32, %v3051_v9  ;;  %v410_v40 = vrot.slane %v401_v32, %v3054_v10 }
   0xe   :  { %347 = vrot.lane.b32.xlu1 %v3031_v2, %s2955_s18  ;;  %345 = vrot.lane.b32.xlu0 %v3019_v0, %s2955_s18  ;;  %248 = vst [vmem:[#allocation2 + $0xc8] sm:$0xff] %v3067_v17  ;;  %247 = vst [vmem:[#allocation2 + $0x20] sm:$0xff] %v3070_v18  ;;  %v361_v43 = vrot.slane %v356_v35, %v3051_v9  ;;  %v373_v59 = vrot.slane %v356_v35, %v3057_v12  ;;  %vm259_vm3 = vcmp.lt.s32.totalorder %v3112_v31, 127  ;;  %vm474_vm8 = vcmask 588800   ;;  %s2965_s18 = smov [#allocation4]  }
   0xf   :  { %250 = vst [vmem:[#allocation2 + $0xa0] sm:$0xff] %v3076_v20  ;;  %249 = vst [vmem:[#allocation2 + $0x90] sm:$0xff] %v3079_v21  ;;  %v365_v60 = vrot.slane %v356_v35, %v3054_v10  ;;  %v369_v61 = vrot.slane %v356_v35, %v3060_v13  ;;  %v316_v11 = vrot.slane %v311_v56, %v3051_v9  ;;  %vm182_vm4 = vcmp.lt.s32.totalorder %v3112_v31, 1 }
  0x10   :  { %v328_v19 = vrot.slane %v311_v56, %v3057_v12  ;;  %vm137_vm5 = vcmp.lt.s32.totalorder %v3112_v31, 15  ;;  %vm92_vm6 = vcmp.lt.s32.totalorder %v3112_v31, 16  ;;  %vm48_vm7 = vcmp.lt.s32.totalorder %v3112_v31, 17  ;;  %v633_v31 = vld [vmem:[%s4182_s5 + $0x20] sm:$0xf] }
  0x11   :  { %vm675_vm9 = vcmask 1043456   ;;  %vm659_vm10 = vcmask 31744   ;;  %vm907_vm11 = vcmask 293888   ;;  %vm2650_vm12 = vcmask 261120  }
  0x12   :  { %298 = vrot.lane.b32.xlu1 %v34_v3, %s2956_s0  ;;  %296 = vrot.lane.b32.xlu0 %v3024_v1, %s2956_s0 }
  0x16   :  { %302 = vrot.lane.b32.xlu1 %v3031_v2, %s2956_s0  ;;  %300 = vrot.lane.b32.xlu0 %v3019_v0, %s2956_s0 }
  0x1a   :  { %253 = vrot.lane.b32.xlu1 %v34_v3, %s2957_s1  ;;  %251 = vrot.lane.b32.xlu0 %v3024_v1, %s2957_s1 }
  0x1e   :  { %257 = vrot.lane.b32.xlu1 %v3031_v2, %s2957_s1  ;;  %255 = vrot.lane.b32.xlu0 %v3019_v0, %s2957_s1 }
  0x22   :  { %176 = vrot.lane.b32.xlu1 %v34_v3, %s2958_s21  ;;  %174 = vrot.lane.b32.xlu0 %v3024_v1, %s2958_s21 }
  0x26   :  { %180 = vrot.lane.b32.xlu1 %v3031_v2, %s2958_s21  ;;  %178 = vrot.lane.b32.xlu0 %v3019_v0, %s2958_s21 }
  0x2a   :  { %131 = vrot.lane.b32.xlu1 %v34_v3, %s2959_s22  ;;  %129 = vrot.lane.b32.xlu0 %v3024_v1, %s2959_s22 }
  0x2e   :  { %135 = vrot.lane.b32.xlu1 %v3031_v2, %s2959_s22  ;;  %133 = vrot.lane.b32.xlu0 %v3019_v0, %s2959_s22 }
  0x32   :  { %86 = vrot.lane.b32.xlu1 %v34_v3, %s2960_s23  ;;  %84 = vrot.lane.b32.xlu0 %v3024_v1, %s2960_s23 }
  0x36   :  { %90 = vrot.lane.b32.xlu1 %v3031_v2, %s2960_s23  ;;  %88 = vrot.lane.b32.xlu0 %v3019_v0, %s2960_s23 }
  0x3a   :  { %40 = vrot.lane.b32.xlu1 %v34_v3, %s2963_s24  ;;  %38 = vrot.lane.b32.xlu0 %v3024_v1, %s2963_s24  ;;  %v265_v3 = vand.u32 1, %v264_v57 }
  0x3c   :  { %v266_v27 = vcvt.s32.f32 %v265_v3 }
  0x3e   :  { %44 = vrot.lane.b32.xlu1 %v3031_v2, %s2963_s24  ;;  %42 = vrot.lane.b32.xlu0 %v3019_v0, %s2963_s24 }
  0x42   :  { %471 = vperm.xlu0 %2872, %v468_v24   ;;  %656 = vperm.xlu1 %2873, %v633_v31  }
  0x46   :  { %646 = vperm.xlu0 %2872, %v631_v25   ;;  %v320_v25 = vrot.slane %v311_v56, %v3054_v10 }
  0x4a   :  { %636 = vperm.xlu0 %2872, %v629_v26   ;;  %v324_v26 = vrot.slane %v311_v56, %v3060_v13 }
  0x74   :  { %v391_v33 = vpop.permute.xlu1 %390  ;;  %v387_v34 = vpop.permute.xlu0 %386 }
  0x78   :  { %v393_v41 = vpop.permute.xlu1 %392  ;;  %v389_v42 = vpop.permute.xlu0 %388 }
  0x79   :  { %v395_v45 = vsel %vm394_vm0, %v391_v33, %v393_v41  ;;  %v398_v46 = vsel %vm394_vm0, %v393_v41, %v387_v34  ;;  %v396_v47 = vsel %vm394_vm0, %v389_v42, %v391_v33  ;;  %v397_v48 = vsel %vm394_vm0, %v387_v34, %v389_v42 }
  0x7a   :  { %v425_v49 = vmul.f32 %v414_v37, %v395_v45  ;;  %v426_v50 = vmul.f32 %v418_v38, %v398_v46  ;;  %v423_v51 = vmul.f32 %v406_v39, %v397_v48  ;;  %v424_v52 = vmul.f32 %v410_v40, %v396_v47 }
  0x7b   :  { %v188_v34 = vand.u32 1, %v187_v23  ;;  %v271_v38 = vrot.slane %v266_v27, %v3051_v9  ;;  %v283_v42 = vrot.slane %v266_v27, %v3057_v12  ;;  %v275_v45 = vrot.slane %v266_v27, %v3054_v10 }
  0x7c   :  { %429 = vst [vmem:[#allocation2 + $0x40] sm:$0xff] %v425_v49  ;;  %430 = vst [vmem:[#allocation2 + $0xe8] sm:$0xff] %v426_v50  ;;  %v344_v53 = vpop.permute.xlu1 %343  ;;  %v342_v54 = vpop.permute.xlu0 %341  ;;  %492 = vmatprep.subr.mxu0 %v424_v52  ;;  %563 = vmatprep.subr.mxu1 %v426_v50  ;;  %v279_v46 = vrot.slane %v266_v27, %v3060_v13  ;;  %v142_v47 = vshra.s32 %v3041_v5, 2 }
  0x7d   :  { %427 = vst [vmem:[#allocation2 + $0x100] sm:$0xff] %v423_v51  ;;  %428 = vst [vmem:[#allocation2] sm:$0xff] %v424_v52  ;;  %v352_v55 = vsel %vm349_vm1, %v342_v54, %v344_v53  ;;  %493 = vmatpush1.msra.mxu0 %v423_v51  ;;  %564 = vmatpush1.msra.mxu1 %v425_v49 }
  0x7e   :  { %v378_v58 = vmul.f32 %v361_v43, %v352_v55  ;;  %v189_v43 = vcvt.s32.f32 %v188_v34  ;;  %v143_v57 = vand.u32 1, %v142_v47 }
  0x80   :  { %382 = vst [vmem:[#allocation2 + $0x50] sm:$0xff] %v378_v58  ;;  %v348_v62 = vpop.permute.xlu1 %347  ;;  %v346_v63 = vpop.permute.xlu0 %345 }
  0x81   :  { %v353_v0 = vsel %vm349_vm1, %v348_v62, %v342_v54  ;;  %v350_v1 = vsel %vm349_vm1, %v346_v63, %v348_v62  ;;  %v351_v2 = vsel %vm349_vm1, %v344_v53, %v346_v63  ;;  %v198_v53 = vrot.slane %v189_v43, %v3054_v10 }
  0x82   :  { %v381_v4 = vmul.f32 %v373_v59, %v353_v0  ;;  %v379_v6 = vmul.f32 %v365_v60, %v351_v2  ;;  %v380_v8 = vmul.f32 %v369_v61, %v350_v1  ;;  %v194_v61 = vrot.slane %v189_v43, %v3051_v9 }
  0x83   :  { %v97_v62 = vshra.s32 %v3041_v5, 1  ;;  %v202_v0 = vrot.slane %v189_v43, %v3060_v13  ;;  %v206_v1 = vrot.slane %v189_v43, %v3057_v12  ;;  %v144_v2 = vcvt.s32.f32 %v143_v57 }
  0x84   :  { %385 = vst [vmem:[#allocation2 + $0x28] sm:$0xff] %v381_v4  ;;  %383 = vst [vmem:[#allocation2 + $0xf0] sm:$0xff] %v379_v6  ;;  %v299_v14 = vpop.permute.xlu1 %298  ;;  %v297_v15 = vpop.permute.xlu0 %296  ;;  %494 = vmatprep.subr.mxu0 %v379_v6  ;;  %565 = vmatprep.subr.mxu1 %v381_v4 }
  0x85   :  { %384 = vst [vmem:[#allocation2 + $0xb8] sm:$0xff] %v380_v8  ;;  %v307_v16 = vsel %vm304_vm2, %v297_v15, %v299_v14  ;;  %495 = vmatpush1.msra.mxu0 %v378_v58  ;;  %566 = vmatpush1.msra.mxu1 %v380_v8  ;;  %v161_v27 = vrot.slane %v144_v2, %v3057_v12 }
  0x86   :  { %v333_v24 = vmul.f32 %v316_v11, %v307_v16 }
  0x88   :  { %337 = vst [vmem:[#allocation2 + $0xa8] sm:$0xff] %v333_v24  ;;  %v303_v28 = vpop.permute.xlu1 %302  ;;  %v301_v29 = vpop.permute.xlu0 %300 }
  0x89   :  { %v308_v30 = vsel %vm304_vm2, %v303_v28, %v297_v15  ;;  %v305_v32 = vsel %vm304_vm2, %v301_v29, %v303_v28  ;;  %v306_v33 = vsel %vm304_vm2, %v299_v14, %v301_v29 }
  0x8a   :  { %v336_v35 = vmul.f32 %v328_v19, %v308_v30  ;;  %v334_v36 = vmul.f32 %v320_v25, %v306_v33  ;;  %v335_v37 = vmul.f32 %v324_v26, %v305_v32  ;;  %v149_v25 = vrot.slane %v144_v2, %v3051_v9 }
  0x8b   :  { %v157_v26 = vrot.slane %v144_v2, %v3060_v13 }
  0x8c   :  { %340 = vst [vmem:[#allocation2 + $0xc0] sm:$0xff] %v336_v35  ;;  %338 = vst [vmem:[#allocation2 + $0x88] sm:$0xff] %v334_v36  ;;  %v254_v39 = vpop.permute.xlu1 %253  ;;  %v252_v40 = vpop.permute.xlu0 %251  ;;  %496 = vmatprep.subr.mxu0 %v334_v36  ;;  %567 = vmatprep.subr.mxu1 %v336_v35 }
  0x8d   :  { %339 = vst [vmem:[#allocation2 + $0xd8] sm:$0xff] %v335_v37  ;;  %v262_v41 = vsel %vm259_vm3, %v252_v40, %v254_v39  ;;  %497 = vmatpush1.msra.mxu0 %v333_v24  ;;  %568 = vmatpush1.msra.mxu1 %v335_v37 }
  0x8e   :  { %v288_v44 = vmul.f32 %v271_v38, %v262_v41  ;;  %v53_v38 = vand.u32 1, %v3041_v5 }
  0x90   :  { %292 = vst [vmem:[#allocation2 + $0x70] sm:$0xff] %v288_v44  ;;  %v258_v48 = vpop.permute.xlu1 %257  ;;  %v256_v49 = vpop.permute.xlu0 %255 }
  0x91   :  { %v263_v50 = vsel %vm259_vm3, %v258_v48, %v252_v40  ;;  %v260_v51 = vsel %vm259_vm3, %v256_v49, %v258_v48  ;;  %v261_v52 = vsel %vm259_vm3, %v254_v39, %v256_v49 }
  0x92   :  { %v291_v54 = vmul.f32 %v283_v42, %v263_v50  ;;  %v289_v55 = vmul.f32 %v275_v45, %v261_v52  ;;  %v290_v56 = vmul.f32 %v279_v46, %v260_v51  ;;  %v54_v46 = vcvt.s32.f32 %v53_v38 }
  0x94   :  { %295 = vst [vmem:[#allocation2 + $0x60] sm:$0xff] %v291_v54  ;;  %293 = vst [vmem:[#allocation2 + $0x58] sm:$0xff] %v289_v55  ;;  %v177_v58 = vpop.permute.xlu1 %176  ;;  %v175_v59 = vpop.permute.xlu0 %174  ;;  %498 = vmatprep.subr.mxu0 %v289_v55  ;;  %569 = vmatprep.subr.mxu1 %v291_v54  ;;  %v63_v54 = vrot.slane %v54_v46, %v3054_v10 }
  0x95   :  { %294 = vst [vmem:[#allocation2 + $0xe0] sm:$0xff] %v290_v56  ;;  %v185_v60 = vsel %vm182_vm4, %v175_v59, %v177_v58  ;;  %499 = vmatpush1.msra.mxu0 %v288_v44  ;;  %570 = vmatpush1.msra.mxu1 %v290_v56 }
  0x96   :  { %v212_v63 = vmul.f32 %v198_v53, %v185_v60  ;;  %500 = vmatprep.subr.mxu0 %v3067_v17  ;;  %571 = vmatprep.subr.mxu1 %v3076_v20  ;;  %v98_v20 = vand.u32 1, %v97_v62  ;;  %v67_v60 = vrot.slane %v54_v46, %v3060_v13 }
  0x97   :  { %501 = vmatpush1.msra.mxu0 %v3070_v18  ;;  %572 = vmatpush1.msra.mxu1 %v3079_v21  ;;  %v153_v21 = vrot.slane %v144_v2, %v3054_v10 }
  0x98   :  { %216 = vst [vmem:[#allocation2 + $0x38] sm:$0xff] %v212_v63  ;;  %v181_v3 = vpop.permute.xlu1 %180  ;;  %v179_v4 = vpop.permute.xlu0 %178  ;;  %502 = vmatprep.subr.mxu0 %v212_v63  ;;  %v99_v23 = vcvt.s32.f32 %v98_v20  ;;  %v630_v20 = vld [vmem:[%s4182_s5 + $0x8] sm:$0xff] }
  0x99   :  { %v186_v6 = vsel %vm182_vm4, %v181_v3, %v175_v59  ;;  %v183_v8 = vsel %vm182_vm4, %v179_v4, %v181_v3  ;;  %v184_v17 = vsel %vm182_vm4, %v177_v58, %v179_v4  ;;  %v59_v59 = vrot.slane %v54_v46, %v3051_v9 }
  0x9a   :  { %v211_v11 = vmul.f32 %v194_v61, %v186_v6  ;;  %v213_v18 = vmul.f32 %v202_v0, %v184_v17  ;;  %v214_v14 = vmul.f32 %v206_v1, %v183_v8  ;;  %v108_v34 = vrot.slane %v99_v23, %v3054_v10  ;;  %v431_v8 = vld [vmem:[%s4179_s2] sm:$0xf]  ;;  %v632_v17 = vld [vmem:[%s4182_s5 + $0x18] sm:$0xff] }
  0x9b   :  { %v104_v42 = vrot.slane %v99_v23, %v3051_v9  ;;  %v112_v44 = vrot.slane %v99_v23, %v3060_v13  ;;  %v116_v45 = vrot.slane %v99_v23, %v3057_v12  ;;  %v71_v61 = vrot.slane %v54_v46, %v3057_v12  ;;  %651 = vperm.xlu1 %2873, %v632_v17  }
  0x9c   :  { %215 = vst [vmem:[#allocation2 + $0xf8] sm:$0xff] %v211_v11  ;;  %217 = vst [vmem:[#allocation2 + $0x8] sm:$0xff] %v213_v18  ;;  %v132_v15 = vpop.permute.xlu1 %131  ;;  %v130_v16 = vpop.permute.xlu0 %129  ;;  %573 = vmatprep.subr.mxu1 %v214_v14  ;;  %503 = vmatpush1.msra.mxu0 %v211_v11  ;;  %v2644_v11 = vld [vmem:[%s4185_s8] sm:$0xf]  ;;  %s2812_s8 = sshll.u32 %s2965_s18, 4  ;;  %s2813_s8 = int_to_ptr.vmem [resolvable:$true] %s2812_s8 }
  0x9d   :  { %218 = vst [vmem:[#allocation2 + $0x78] sm:$0xff] %v214_v14  ;;  %v140_v19 = vsel %vm137_vm5, %v130_v16, %v132_v15  ;;  %574 = vmatpush1.msra.mxu1 %v213_v18  ;;  %p2937_p1 = scmp.lt.s32.totalorder %s2813_s8, %s2813_s8 }
  0x9e   :  { %v167_v24 = vmul.f32 %v153_v21, %v140_v19 }
  0x9f   :  { %641 = vperm.xlu1 %2873, %v630_v20  }
  0xa0   :  { %171 = vst [vmem:[#allocation2 + $0x110] sm:$0xff] %v167_v24  ;;  %v136_v28 = vpop.permute.xlu1 %135  ;;  %v134_v29 = vpop.permute.xlu0 %133  ;;  %504 = vmatprep.subr.mxu0 %v167_v24 }
  0xa1   :  { %v141_v30 = vsel %vm137_vm5, %v136_v28, %v130_v16  ;;  %v138_v32 = vsel %vm137_vm5, %v134_v29, %v136_v28  ;;  %v139_v33 = vsel %vm137_vm5, %v132_v15, %v134_v29  ;;  %v624_v28 = vld [vmem:[%s4181_s4] sm:$0xff] }
  0xa2   :  { %v166_v35 = vmul.f32 %v149_v25, %v141_v30  ;;  %v168_v36 = vmul.f32 %v157_v26, %v139_v33  ;;  %v169_v37 = vmul.f32 %v161_v27, %v138_v32  ;;  %v625_v32 = vld [vmem:[%s4181_s4 + $0x8] sm:$0xff]  ;;  %v626_v33 = vld [vmem:[%s4181_s4 + $0x10] sm:$0xff] }
  0xa3   :  { %2647 = vperm.xlu1 %2873, %v2644_v11  }
  0xa4   :  { %170 = vst [vmem:[#allocation2 + $0x80] sm:$0xff] %v166_v35  ;;  %172 = vst [vmem:[#allocation2 + $0x118] sm:$0xff] %v168_v36  ;;  %v87_v39 = vpop.permute.xlu1 %86  ;;  %v85_v40 = vpop.permute.xlu0 %84  ;;  %575 = vmatprep.subr.mxu1 %v169_v37  ;;  %505 = vmatpush1.msra.mxu0 %v166_v35  ;;  %v628_v35 = vld [vmem:[%s4181_s4 + $0x20] sm:$0xf] }
  0xa5   :  { %173 = vst [vmem:[#allocation2 + $0x98] sm:$0xff] %v169_v37  ;;  %v95_v41 = vsel %vm92_vm6, %v85_v40, %v87_v39  ;;  %576 = vmatpush1.msra.mxu1 %v168_v36 }
  0xa6   :  { %v122_v43 = vmul.f32 %v108_v34, %v95_v41  ;;  %v627_v34 = vld [vmem:[%s4181_s4 + $0x18] sm:$0xff] }
  0xa8   :  { %126 = vst [vmem:[#allocation2 + $0x68] sm:$0xff] %v122_v43  ;;  %v91_v5 = vpop.permute.xlu1 %90  ;;  %v89_v47 = vpop.permute.xlu0 %88  ;;  %506 = vmatprep.subr.mxu0 %v122_v43 }
  0xa9   :  { %v96_v48 = vsel %vm92_vm6, %v91_v5, %v85_v40  ;;  %v93_v49 = vsel %vm92_vm6, %v89_v47, %v91_v5  ;;  %v94_v50 = vsel %vm92_vm6, %v87_v39, %v89_v47 }
  0xaa   :  { %v121_v51 = vmul.f32 %v104_v42, %v96_v48  ;;  %v123_v52 = vmul.f32 %v112_v44, %v94_v50  ;;  %v124_v53 = vmul.f32 %v116_v45, %v93_v49 }
  0xac   :  { %125 = vst [vmem:[#allocation2 + $0x108] sm:$0xff] %v121_v51  ;;  %127 = vst [vmem:[#allocation2 + $0x30] sm:$0xff] %v123_v52  ;;  %v41_v55 = vpop.permute.xlu1 %40  ;;  %v39_v56 = vpop.permute.xlu0 %38  ;;  %507 = vmatpush1.msra.mxu0 %v121_v51  ;;  %577 = vmatprep.subr.mxu1 %v124_v53 }
  0xad   :  { %128 = vst [vmem:[#allocation2 + $0x18] sm:$0xff] %v124_v53  ;;  %v51_v57 = vsel %vm48_vm7, %v39_v56, %v41_v55  ;;  %578 = vmatpush1.msra.mxu1 %v123_v52 }
  0xae   :  { %v77_v58 = vmul.f32 %v63_v54, %v51_v57 }
  0xb0   :  { %81 = vst [vmem:[#allocation2 + $0xd0] sm:$0xff] %v77_v58  ;;  %v45_v62 = vpop.permute.xlu1 %44  ;;  %v43_v63 = vpop.permute.xlu0 %42  ;;  %508 = vmatprep.subr.mxu0 %v77_v58 }
  0xb1   :  { %v52_v0 = vsel %vm48_vm7, %v45_v62, %v39_v56  ;;  %v49_v1 = vsel %vm48_vm7, %v43_v63, %v45_v62  ;;  %v50_v2 = vsel %vm48_vm7, %v41_v55, %v43_v63 }
  0xb2   :  { %v76_v3 = vmul.f32 %v59_v59, %v52_v0  ;;  %v78_v4 = vmul.f32 %v67_v60, %v50_v2  ;;  %v79_v6 = vmul.f32 %v71_v61, %v49_v1 }
  0xb4   :  { %80 = vst [vmem:[#allocation2 + $0xb0] sm:$0xff] %v76_v3  ;;  %82 = vst [vmem:[#allocation2 + $0x10] sm:$0xff] %v78_v4  ;;  %509 = vmatpush1.msra.mxu0 %v76_v3  ;;  %579 = vmatprep.subr.mxu1 %v79_v6 }
  0xb5   :  { %83 = vst [vmem:[#allocation2 + $0x48] sm:$0xff] %v79_v6  ;;  %2820 = vmatmul.mubr.msk.f32.vlgmr.msra.gmra.mxu0 %vm474_vm8, %v431_v8  ;;  %580 = vmatpush1.msra.mxu1 %v78_v4 }
  0xb6   :  { %2821 = vmatmul.mubr.msk.f32.vlgmr.msra.gmra.mxu1 %vm474_vm8, %v431_v8  ;;  %752 = vmatprep.mubr.f32.mxu0 %v2961_v22 }
  0xb7   :  { %847 = vmatprep.mubr.f32.mxu1 %v2961_v22 }
  0xbd   :  { %v472_v18 = vpop.permute.xlu0 %471  ;;  %v657_v36 = vpop.permute.xlu1 %656 }
  0xc1   :  { %v647_v37 = vpop.permute.xlu0 %646 }
  0xc5   :  { %v637_v45 = vpop.permute.xlu0 %636 }
 0x116   :  { %v652_v39 = vpop.permute.xlu1 %651 }
 0x11a   :  { %v642_v5 = vpop.permute.xlu1 %641 }
 0x175   :  { %v544_v14 = vpop.f32.mrf.mxu0 }
 0x176   :  { %v545_v21 = vadd.f32 %v544_v14, %v472_v18  ;;  %v615_v15 = vpop.f32.mrf.mxu1 }
 0x177   :  { %v546_v16 = vpop.f32.mrf.mxu0  ;;  %v616_v19 = vadd.f32 %v615_v15, %v472_v18 }
 0x178   :  { %v547_v23 = vadd.f32 %v546_v16, %v472_v18  ;;  %v617_v24 = vpop.f32.mrf.mxu1  ;;  %2884 = vtanh.f32 %v545_v21 }
 0x179   :  { %v618_v25 = vadd.f32 %v617_v24, %v472_v18 }
 0x17a   :  { %2886 = vtanh.f32 %v547_v23 }
 0x17b   :  { %2888 = vtanh.f32 %v618_v25 }
 0x17c   :  { %2890 = vtanh.f32 %v616_v19 }
 0x185   :  { %v2885_v26 = vpop.eup %2884 }
 0x187   :  { %v2887_v27 = vpop.eup %2886 }
 0x188   :  { %v2889_v29 = vpop.eup %2888  ;;  %2822 = vmatprep.subr.msk.mxu0 %vm675_vm9, %v2887_v27 }
 0x189   :  { %v2891_v30 = vpop.eup %2890  ;;  %2823 = vmatpush1.msk.msra.mxu0 %vm675_vm9, %v2885_v26  ;;  %2829 = vmatprep.subr.msk.mxu1 %vm675_vm9, %v2889_v29 }
 0x18a   :  { %2824 = vmatmul.mubr.msk.f32.vlgmr.msra.gmra.mxu0 %vm659_vm10, %v624_v28  ;;  %2830 = vmatpush1.msk.msra.mxu1 %vm675_vm9, %v2891_v30 }
 0x18b   :  { %2831 = vmatmul.mubr.msk.f32.vlgmr.msra.gmra.mxu1 %vm659_vm10, %v624_v28  ;;  %758 = vmatprep.mubr.f32.mxu0 %v2961_v22 }
 0x18c   :  { %853 = vmatprep.mubr.f32.mxu1 %v2961_v22 }
 0x18e   :  { %2825 = vmatmul.mubr.msk.f32.gmra.mxu0 %vm659_vm10, %v625_v32 }
 0x18f   :  { %2832 = vmatmul.mubr.msk.f32.gmra.mxu1 %vm659_vm10, %v625_v32  ;;  %764 = vmatprep.mubr.f32.mxu0 %v2961_v22 }
 0x190   :  { %859 = vmatprep.mubr.f32.mxu1 %v2961_v22 }
 0x192   :  { %2826 = vmatmul.mubr.msk.f32.gmra.mxu0 %vm659_vm10, %v626_v33 }
 0x193   :  { %2833 = vmatmul.mubr.msk.f32.gmra.mxu1 %vm659_vm10, %v626_v33  ;;  %770 = vmatprep.mubr.f32.mxu0 %v2961_v22 }
 0x194   :  { %865 = vmatprep.mubr.f32.mxu1 %v2961_v22 }
 0x196   :  { %2827 = vmatmul.mubr.msk.f32.gmra.mxu0 %vm659_vm10, %v627_v34 }
 0x197   :  { %2834 = vmatmul.mubr.msk.f32.gmra.mxu1 %vm659_vm10, %v627_v34  ;;  %776 = vmatprep.mubr.f32.mxu0 %v2961_v22 }
 0x198   :  { %871 = vmatprep.mubr.f32.mxu1 %v2961_v22 }
 0x19a   :  { %2828 = vmatmul.mubr.msk.f32.gmra.mxu0 %vm659_vm10, %v628_v35 }
 0x19b   :  { %2835 = vmatmul.mubr.msk.f32.gmra.mxu1 %vm659_vm10, %v628_v35  ;;  %1011 = vmatprep.mubr.f32.mxu0 %v2961_v22 }
 0x19c   :  { %1130 = vmatprep.mubr.f32.mxu1 %v2961_v22 }
 0x24a   :  { %v754_v38 = vpop.f32.mrf.mxu0 }
 0x24b   :  { %v849_v40 = vpop.f32.mrf.mxu1  ;;  %v755_v48 = vadd.f32 %v754_v38, %v637_v45 }
 0x24c   :  { %v756_v41 = vpop.f32.mrf.mxu0  ;;  %v850_v24 = vadd.f32 %v849_v40, %v637_v45 }
 0x24d   :  { %v851_v42 = vpop.f32.mrf.mxu1  ;;  %v757_v50 = vadd.f32 %v756_v41, %v637_v45  ;;  %2892 = vtanh.f32 %v755_v48  ;;  %v898_v41 = vld [vmem:[%s4183_s6] sm:$0xff]  ;;  %v904_v48 = vld [vmem:[%s4183_s6 + $0x30] sm:$0xff] }
 0x24e   :  { %v760_v43 = vpop.f32.mrf.mxu0  ;;  %v852_v19 = vadd.f32 %v851_v42, %v637_v45  ;;  %v900_v45 = vld [vmem:[%s4183_s6 + $0x10] sm:$0xff] }
 0x24f   :  { %v855_v44 = vpop.f32.mrf.mxu1  ;;  %v761_v52 = vadd.f32 %v760_v43, %v642_v5  ;;  %2894 = vtanh.f32 %v757_v50  ;;  %v906_v50 = vld [vmem:[%s4183_s6 + $0x40] sm:$0xff] }
 0x250   :  { %v762_v46 = vpop.f32.mrf.mxu0  ;;  %v856_v15 = vadd.f32 %v855_v44, %v642_v5  ;;  %v899_v44 = vld [vmem:[%s4183_s6 + $0x8] sm:$0xff] }
 0x251   :  { %v857_v47 = vpop.f32.mrf.mxu1  ;;  %v763_v54 = vadd.f32 %v762_v46, %v642_v5  ;;  %2896 = vtanh.f32 %v761_v52  ;;  %v901_v46 = vld [vmem:[%s4183_s6 + $0x18] sm:$0xff] }
 0x252   :  { %v766_v49 = vpop.f32.mrf.mxu0  ;;  %v858_v14 = vadd.f32 %v857_v47, %v642_v5  ;;  %v902_v5 = vld [vmem:[%s4183_s6 + $0x20] sm:$0xff]  ;;  %v903_v47 = vld [vmem:[%s4183_s6 + $0x28] sm:$0xff] }
 0x253   :  { %v861_v51 = vpop.f32.mrf.mxu1  ;;  %v767_v56 = vadd.f32 %v766_v49, %v647_v37  ;;  %2898 = vtanh.f32 %v763_v54  ;;  %v905_v49 = vld [vmem:[%s4183_s6 + $0x38] sm:$0xff]  ;;  %v2485_v54 = vld [vmem:[#allocation2 + $0x100] sm:$0xf] }
 0x254   :  { %v768_v53 = vpop.f32.mrf.mxu0  ;;  %v862_v18 = vadd.f32 %v861_v51, %v647_v37  ;;  %v2964_v51 = vmov 1966171168  }
 0x255   :  { %v863_v55 = vpop.f32.mrf.mxu1  ;;  %v769_v58 = vadd.f32 %v768_v53, %v647_v37  ;;  %2900 = vtanh.f32 %v767_v56  ;;  %v1236_v52 = vunpack.c.l.s4 %v2964_v51 }
 0x256   :  { %v772_v57 = vpop.f32.mrf.mxu0  ;;  %v864_v11 = vadd.f32 %v863_v55, %v647_v37  ;;  %v2486_v55 = vld [vmem:[#allocation2] sm:$0xf] }
 0x257   :  { %v867_v59 = vpop.f32.mrf.mxu1  ;;  %v773_v60 = vadd.f32 %v772_v57, %v652_v39  ;;  %2902 = vtanh.f32 %v769_v58  ;;  %v1237_v53 = vunpack.c.0.s8 %v1236_v52  ;;  %v2497_v57 = vcombine.low %v2485_v54, %v2486_v55  ;;  %v2883_v58 = vld [vmem:[#allocation2 + $0x40] ss:$168 sps:$4 sm:$0xff]  }
 0x258   :  { %v774_v61 = vpop.f32.mrf.mxu0  ;;  %v868_v20 = vadd.f32 %v867_v59, %v652_v39  ;;  %v2328_v59 = vld [vmem:[#allocation2 + $0xf0] sm:$0xf] }
 0x259   :  { %v775_v62 = vadd.f32 %v774_v61, %v652_v39  ;;  %v869_v63 = vpop.f32.mrf.mxu1  ;;  %2904 = vtanh.f32 %v773_v60  ;;  %v3344_v56 = vsub.s32 %v1237_v53, %v3047_v7 }
 0x25a   :  { %v778_v0 = vpop.f32.mrf.mxu0  ;;  %v870_v31 = vadd.f32 %v869_v63, %v652_v39  ;;  %v2893_v21 = vpop.eup %2892 }
 0x25b   :  { %v779_v1 = vadd.f32 %v778_v0, %v657_v36  ;;  %v873_v2 = vpop.f32.mrf.mxu1  ;;  %2906 = vtanh.f32 %v775_v62  ;;  %v2505_v60 = vrot.slane %v2497_v57, %v3344_v56  ;;  %v2512_v61 = vrot.slane %v2883_v58, %v3344_v56  ;;  %v2327_v62 = vld [vmem:[#allocation2 + $0x50] sm:$0xf]  ;;  %v2882_v0 = vld [vmem:[#allocation2 + $0xb8] ss:$-144 sps:$4 sm:$0xff]  }
 0x25c   :  { %v780_v3 = vpop.f32.mrf.mxu0  ;;  %v874_v4 = vadd.f32 %v873_v2, %v657_v36  ;;  %v2895_v16 = vpop.eup %2894  ;;  %v2339_v63 = vcombine.low %v2327_v62, %v2328_v59 }
 0x25d   :  { %v781_v6 = vadd.f32 %v780_v3, %v657_v36  ;;  %v875_v8 = vpop.f32.mrf.mxu1  ;;  %2908 = vtanh.f32 %v779_v1  ;;  %v2170_v1 = vld [vmem:[#allocation2 + $0x88] sm:$0xf]  ;;  %v2514_v2 = vcombine.high %v2505_v60, %v2512_v61 }
 0x25e   :  { %v876_v17 = vadd.f32 %v875_v8, %v657_v36  ;;  %v2897_v23 = vpop.eup %2896  ;;  %v2169_v3 = vld [vmem:[#allocation2 + $0xa8] sm:$0xf]  ;;  %v2881_v8 = vld [vmem:[#allocation2 + $0xd8] ss:$-24 sps:$4 sm:$0xff]  }
 0x25f   :  { %2910 = vtanh.f32 %v781_v6  ;;  %v2354_v6 = vrot.slane %v2882_v0, %v3344_v56  ;;  %v2181_v7 = vcombine.low %v2169_v3, %v2170_v1 }
 0x260   :  { %2912 = vtanh.f32 %v876_v17  ;;  %v2899_v25 = vpop.eup %2898  ;;  %v3354_v17 = vrot.slane %v2514_v2, %v3344_v56 }
 0x261   :  { %2914 = vtanh.f32 %v874_v4  ;;  %v2347_v4 = vrot.slane %v2339_v63, %v3344_v56  ;;  %v1222_v63 = vld [vmem:[#allocation2 + $0xd0] sm:$0xf] }
 0x262   :  { %2916 = vtanh.f32 %v870_v31  ;;  %v2901_v26 = vpop.eup %2900  ;;  %4226 = vst [vmem:[#allocation8_spill] sm:$0xff] %v3354_v17 }
 0x263   :  { %2918 = vtanh.f32 %v868_v20  ;;  %v2013_v20 = vld [vmem:[#allocation2 + $0xe0] sm:$0xf] }
 0x264   :  { %2920 = vtanh.f32 %v864_v11  ;;  %v2903_v27 = vpop.eup %2902  ;;  %v2014_v11 = vld [vmem:[#allocation2 + $0x60] sm:$0xf] }
 0x265   :  { %2922 = vtanh.f32 %v862_v18  ;;  %v2355_v18 = vcombine.low %v2347_v4, %v2354_v6 }
 0x266   :  { %2924 = vtanh.f32 %v858_v14  ;;  %v2905_v28 = vpop.eup %2904  ;;  %v2356_v14 = vcombine.high %v2347_v4, %v2354_v6 }
 0x267   :  { %2926 = vtanh.f32 %v856_v15  ;;  %v2196_v15 = vrot.slane %v2881_v8, %v3344_v56 }
 0x268   :  { %2928 = vtanh.f32 %v852_v19  ;;  %v2907_v29 = vpop.eup %2906  ;;  %v2024_v19 = vcombine.low %v2013_v20, %v2014_v11 }
 0x269   :  { %2930 = vtanh.f32 %v850_v24  ;;  %v3364_v24 = vcombine.high %v3354_v17, %v3354_v17 }
 0x26a   :  { %v2909_v30 = vpop.eup %2908 }
 0x26b   :  { %4228 = vst [vmem:[#allocation10_spill] sm:$0xff] %v3364_v24 }
 0x26c   :  { %v2911_v32 = vpop.eup %2910 }
 0x26d   :  { %v2913_v33 = vpop.eup %2912  ;;  %2836 = vmatprep.subr.msk.mxu0 %vm675_vm9, %v2911_v32 }
 0x26e   :  { %v2915_v34 = vpop.eup %2914  ;;  %2837 = vmatpush1.msk.msra.mxu0 %vm675_vm9, %v2909_v30  ;;  %2847 = vmatprep.subr.msk.mxu1 %vm675_vm9, %v2913_v33  ;;  %v1696_v33 = vld [vmem:[#allocation2 + $0x38] sm:$0xf] }
 0x26f   :  { %v2917_v35 = vpop.eup %2916  ;;  %971 = vmatprep.subr.mxu0 %v2907_v29  ;;  %2848 = vmatpush1.msk.msra.mxu1 %vm675_vm9, %v2915_v34 }
 0x270   :  { %v2919_v36 = vpop.eup %2918  ;;  %972 = vmatpush1.msra.mxu0 %v2905_v28  ;;  %1090 = vmatprep.subr.mxu1 %v2917_v35  ;;  %v2038_v35 = vrot.slane %v2024_v19, %v3344_v56 }
 0x271   :  { %v2921_v37 = vpop.eup %2920  ;;  %973 = vmatprep.subr.mxu0 %v2903_v27  ;;  %1091 = vmatpush1.msra.mxu1 %v2919_v36  ;;  %v3370_v27 = vrot.slane %v2356_v14, %v3344_v56  ;;  %v1221_v14 = vld [vmem:[#allocation2 + $0xb0] sm:$0xf] }
 0x272   :  { %v2923_v38 = vpop.eup %2922  ;;  %974 = vmatpush1.msra.mxu0 %v2901_v26  ;;  %1092 = vmatprep.subr.mxu1 %v2921_v37  ;;  %v3367_v26 = vrot.slane %v2355_v18, %v3344_v56 }
 0x273   :  { %v2925_v39 = vpop.eup %2924  ;;  %975 = vmatprep.subr.mxu0 %v2899_v25  ;;  %1093 = vmatpush1.msra.mxu1 %v2923_v38  ;;  %v1695_v25 = vld [vmem:[#allocation2 + $0xf8] sm:$0xf]  ;;  %4230 = vst [vmem:[#allocation12_spill] sm:$0xff] %v3370_v27 }
 0x274   :  { %v2927_v40 = vpop.eup %2926  ;;  %976 = vmatpush1.msra.mxu0 %v2897_v23  ;;  %1094 = vmatprep.subr.mxu1 %v2925_v39  ;;  %4229 = vst [vmem:[#allocation11_spill] sm:$0xff] %v3367_v26  ;;  %v1707_v38 = vcombine.low %v1695_v25, %v1696_v33  ;;  %v2877_v39 = vld [vmem:[#allocation2 + $0x8] ss:$112 sps:$4 sm:$0xff]  }
 0x275   :  { %v2929_v42 = vpop.eup %2928  ;;  %977 = vmatprep.subr.mxu0 %v2895_v16  ;;  %1095 = vmatpush1.msra.mxu1 %v2927_v40  ;;  %v2880_v16 = vld [vmem:[#allocation2 + $0x70] ss:$-24 sps:$4 sm:$0xff]   ;;  %v1722_v58 = vrot.slane %v2877_v39, %v3344_v56 }
 0x276   :  { %v2931_v43 = vpop.eup %2930  ;;  %978 = vmatpush1.msra.mxu0 %v2893_v21  ;;  %1096 = vmatprep.subr.mxu1 %v2929_v42  ;;  %v2189_v21 = vrot.slane %v2181_v7, %v3344_v56  ;;  %v2031_v34 = vrot.slane %v2880_v16, %v3344_v56  ;;  %v1715_v57 = vrot.slane %v1707_v38, %v3344_v56 }
 0x277   :  { %2838 = vmatmul.mubr.msk.f32.vlgmr.msra.gmra.mxu0 %vm907_vm11, %v898_v41  ;;  %1097 = vmatpush1.msra.mxu1 %v2931_v43  ;;  %v3390_v43 = vcombine.high %v3367_v26, %v3367_v26 }
 0x278   :  { %2849 = vmatmul.mubr.msk.f32.vlgmr.msra.gmra.mxu1 %vm907_vm11, %v898_v41  ;;  %1017 = vmatprep.mubr.f32.mxu0 %v2961_v22  ;;  %v2197_v28 = vcombine.low %v2189_v21, %v2196_v15  ;;  %v2198_v29 = vcombine.high %v2189_v21, %v2196_v15  ;;  %v2039_v52 = vcombine.low %v2031_v34, %v2038_v35  ;;  %v2879_v21 = vld [vmem:[#allocation2 + $0x90] ss:$16 sps:$4 sm:$0xff]  }
 0x279   :  { %1136 = vmatprep.mubr.f32.mxu1 %v2961_v22  ;;  %4231 = vst [vmem:[#allocation13_spill] sm:$0xff] %v3390_v43  ;;  %v2040_v53 = vcombine.high %v2031_v34, %v2038_v35  ;;  %v1723_v11 = vcombine.low %v1715_v57, %v1722_v58  ;;  %v1724_v18 = vcombine.high %v1715_v57, %v1722_v58  ;;  %v1379_v35 = vld [vmem:[#allocation2 + $0x108] sm:$0xf] }
 0x27a   :  { %v3439_v6 = vrot.slane %v2039_v52, %v3344_v56 }
 0x27b   :  { %2839 = vmatmul.mubr.msk.f32.gmra.mxu0 %vm907_vm11, %v899_v44  ;;  %v3442_v7 = vrot.slane %v2040_v53, %v3344_v56  ;;  %v3479_v52 = vrot.slane %v1723_v11, %v3344_v56  ;;  %v3482_v53 = vrot.slane %v1724_v18, %v3344_v56  ;;  %v2875_v18 = vld [vmem:[#allocation2 + $0x30] ss:$-24 sps:$4 sm:$0xff]  }
 0x27c   :  { %2850 = vmatmul.mubr.msk.f32.gmra.mxu1 %vm907_vm11, %v899_v44  ;;  %1023 = vmatprep.mubr.f32.mxu0 %v2961_v22  ;;  %v3394_v44 = vcombine.high %v3370_v27, %v3370_v27  ;;  %4237 = vst [vmem:[#allocation19_spill] sm:$0xff] %v3439_v6  ;;  %v3468_v38 = vcombine.high %v3439_v6, %v3439_v6  ;;  %v2874_v11 = vld [vmem:[#allocation2 + $0x10] ss:$56 sps:$4 sm:$0xff]  }
 0x27d   :  { %1142 = vmatprep.mubr.f32.mxu1 %v2961_v22  ;;  %4238 = vst [vmem:[#allocation20_spill] sm:$0xff] %v3442_v7  ;;  %v3472_v39 = vcombine.high %v3442_v7, %v3442_v7  ;;  %v1406_v1 = vrot.slane %v2875_v18, %v3344_v56 }
 0x27e   :  { %4232 = vst [vmem:[#allocation14_spill] sm:$0xff] %v3394_v44  ;;  %4239 = vst [vmem:[#allocation21_spill] sm:$0xff] %v3468_v38 }
 0x27f   :  { %2840 = vmatmul.mubr.msk.f32.gmra.mxu0 %vm907_vm11, %v900_v45  ;;  %4240 = vst [vmem:[#allocation22_spill] sm:$0xff] %v3472_v39 }
 0x280   :  { %2851 = vmatmul.mubr.msk.f32.gmra.mxu1 %vm907_vm11, %v900_v45  ;;  %1029 = vmatprep.mubr.f32.mxu0 %v2961_v22  ;;  %v1233_v45 = vcombine.low %v1221_v14, %v1222_v63 }
 0x281   :  { %1148 = vmatprep.mubr.f32.mxu1 %v2961_v22 }
 0x282   :  { %v1241_v19 = vrot.slane %v1233_v45, %v3344_v56 }
 0x283   :  { %2841 = vmatmul.mubr.msk.f32.gmra.mxu0 %vm907_vm11, %v901_v46 }
 0x284   :  { %2852 = vmatmul.mubr.msk.f32.gmra.mxu1 %vm907_vm11, %v901_v46  ;;  %1035 = vmatprep.mubr.f32.mxu0 %v2961_v22 }
 0x285   :  { %1154 = vmatprep.mubr.f32.mxu1 %v2961_v22 }
 0x287   :  { %2842 = vmatmul.mubr.msk.f32.gmra.mxu0 %vm907_vm11, %v902_v5 }
 0x288   :  { %2853 = vmatmul.mubr.msk.f32.gmra.mxu1 %vm907_vm11, %v902_v5  ;;  %1041 = vmatprep.mubr.f32.mxu0 %v2961_v22  ;;  %v1539_v5 = vld [vmem:[#allocation2 + $0x118] sm:$0xf] }
 0x289   :  { %1160 = vmatprep.mubr.f32.mxu1 %v2961_v22 }
 0x28b   :  { %2843 = vmatmul.mubr.msk.f32.gmra.mxu0 %vm907_vm11, %v903_v47 }
 0x28c   :  { %2854 = vmatmul.mubr.msk.f32.gmra.mxu1 %vm907_vm11, %v903_v47  ;;  %1047 = vmatprep.mubr.f32.mxu0 %v2961_v22  ;;  %v1540_v47 = vld [vmem:[#allocation2 + $0x98] sm:$0xf] }
 0x28d   :  { %1166 = vmatprep.mubr.f32.mxu1 %v2961_v22  ;;  %v1550_v62 = vcombine.low %v1539_v5, %v1540_v47 }
 0x28f   :  { %2844 = vmatmul.mubr.msk.f32.gmra.mxu0 %vm907_vm11, %v904_v48  ;;  %v1564_v16 = vrot.slane %v1550_v62, %v3344_v56 }
 0x290   :  { %2855 = vmatmul.mubr.msk.f32.gmra.mxu1 %vm907_vm11, %v904_v48  ;;  %1053 = vmatprep.mubr.f32.mxu0 %v2961_v22  ;;  %v3401_v48 = vrot.slane %v2197_v28, %v3344_v56 }
 0x291   :  { %1172 = vmatprep.mubr.f32.mxu1 %v2961_v22 }
 0x292   :  { %4233 = vst [vmem:[#allocation15_spill] sm:$0xff] %v3401_v48 }
 0x293   :  { %2845 = vmatmul.mubr.msk.f32.gmra.mxu0 %vm907_vm11, %v905_v49 }
 0x294   :  { %2856 = vmatmul.mubr.msk.f32.gmra.mxu1 %vm907_vm11, %v905_v49  ;;  %1059 = vmatprep.mubr.f32.mxu0 %v2961_v22  ;;  %v3404_v49 = vrot.slane %v2198_v29, %v3344_v56  ;;  %v1880_v29 = vrot.slane %v2879_v21, %v3344_v56 }
 0x295   :  { %1178 = vmatprep.mubr.f32.mxu1 %v2961_v22 }
 0x296   :  { %4234 = vst [vmem:[#allocation16_spill] sm:$0xff] %v3404_v49  ;;  %v3432_v2 = vcombine.high %v3404_v49, %v3404_v49 }
 0x297   :  { %2846 = vmatmul.mubr.msk.f32.gmra.mxu0 %vm907_vm11, %v906_v50 }
 0x298   :  { %2857 = vmatmul.mubr.msk.f32.gmra.mxu1 %vm907_vm11, %v906_v50  ;;  %2718 = vmatprep.mubr.f32.mxu0 %v2961_v22  ;;  %4236 = vst [vmem:[#allocation18_spill] sm:$0xff] %v3432_v2 }
 0x299   :  { %2789 = vmatprep.mubr.f32.mxu1 %v2961_v22  ;;  %v2513_v22 = vcombine.low %v2505_v60, %v2512_v61  ;;  %v2876_v61 = vld [vmem:[#allocation2 + $0x80] ss:$144 sps:$4 sm:$0xff]  }
 0x29a   :  { %v1557_v15 = vrot.slane %v2876_v61, %v3344_v56  ;;  %v1380_v61 = vld [vmem:[#allocation2 + $0x68] sm:$0xf] }
 0x29b   :  { %v3351_v31 = vrot.slane %v2513_v22, %v3344_v56  ;;  %v3428_v22 = vcombine.high %v3401_v48, %v3401_v48  ;;  %v1391_v46 = vcombine.low %v1379_v35, %v1380_v61 }
 0x29c   :  { %v1565_v62 = vcombine.low %v1557_v15, %v1564_v16  ;;  %v1566_v42 = vcombine.high %v1557_v15, %v1564_v16  ;;  %v3508_v15 = vcombine.high %v3479_v52, %v3479_v52  ;;  %v3512_v16 = vcombine.high %v3482_v53, %v3482_v53 }
 0x29d   :  { %4225 = vst [vmem:[#allocation7_spill] sm:$0xff] %v3351_v31  ;;  %v3360_v23 = vcombine.high %v3351_v31, %v3351_v31  ;;  %4235 = vst [vmem:[#allocation17_spill] sm:$0xff] %v3428_v22  ;;  %v1399_v20 = vrot.slane %v1391_v46, %v3344_v56  ;;  %v1248_v46 = vrot.slane %v2874_v11, %v3344_v56 }
 0x29e   :  { %v3519_v36 = vrot.slane %v1565_v62, %v3344_v56  ;;  %v3530_v8 = vrot.slane %v1566_v42, %v3344_v56  ;;  %v2878_v62 = vld [vmem:[#allocation2 + $0x20] ss:$168 sps:$4 sm:$0xff]  }
 0x29f   :  { %4227 = vst [vmem:[#allocation9_spill] sm:$0xff] %v3360_v23  ;;  %v1407_v57 = vcombine.low %v1399_v20, %v1406_v1  ;;  %v1408_v47 = vcombine.high %v1399_v20, %v1406_v1  ;;  %v1249_v51 = vcombine.low %v1241_v19, %v1248_v46  ;;  %v1873_v28 = vrot.slane %v2878_v62, %v3344_v56 }
 0x2a0   :  { %v3552_v50 = vcombine.high %v3519_v36, %v3519_v36  ;;  %v3560_v5 = vcombine.high %v3530_v8, %v3530_v8  ;;  %v1250_v33 = vcombine.high %v1241_v19, %v1248_v46 }
 0x2a1   :  { %v3587_v30 = vrot.slane %v1407_v57, %v3344_v56  ;;  %v3590_v32 = vrot.slane %v1408_v47, %v3344_v56  ;;  %v3643_v62 = vrot.slane %v1249_v51, %v3344_v56  ;;  %v1881_v60 = vcombine.low %v1873_v28, %v1880_v29 }
 0x2a2   :  { %v1882_v19 = vcombine.high %v1873_v28, %v1880_v29  ;;  %v3648_v18 = vrot.slane %v1250_v33, %v3344_v56 }
 0x2a3   :  { %v3618_v34 = vcombine.high %v3587_v30, %v3587_v30  ;;  %v3622_v14 = vcombine.high %v3590_v32, %v3590_v32  ;;  %v3674_v47 = vcombine.high %v3643_v62, %v3643_v62  ;;  %v3677_v57 = vrot.slane %v1881_v60, %v3344_v56 }
 0x2a4   :  { %v3680_v35 = vrot.slane %v1882_v19, %v3344_v56  ;;  %v3686_v11 = vcombine.high %v3648_v18, %v3648_v18  ;;  %v1270_v56 = vrot.slane %v3643_v62, %v3051_v9  ;;  %v1286_v45 = vrot.slane %v3648_v18, %v3051_v9 }
 0x2a5   :  { %v1278_v3 = vrot.slane %v3643_v62, %v3060_v13  ;;  %v1294_v60 = vrot.slane %v3648_v18, %v3060_v13  ;;  %v1274_v0 = vrot.slane %v3643_v62, %v3054_v10  ;;  %v1302_v19 = vrot.slane %v3674_v47, %v3051_v9 }
 0x2a6   :  { %4241 = vst [vmem:[#allocation23_spill] sm:$0xff] %v3680_v35  ;;  %v1290_v61 = vrot.slane %v3648_v18, %v3054_v10  ;;  %v3716_v37 = vcombine.high %v3677_v57, %v3677_v57  ;;  %v3720_v20 = vcombine.high %v3680_v35, %v3680_v35  ;;  %v1318_v1 = vrot.slane %v3686_v11, %v3051_v9 }
 0x2a7   :  { %v1310_v54 = vrot.slane %v3674_v47, %v3060_v13  ;;  %v1326_v40 = vrot.slane %v3686_v11, %v3060_v13  ;;  %v1306_v41 = vrot.slane %v3674_v47, %v3054_v10  ;;  %v1322_v33 = vrot.slane %v3686_v11, %v3054_v10 }
 0x2a8   :  { %4242 = vst [vmem:[#allocation24_spill] sm:$0xff] %v3716_v37  ;;  %4243 = vst [vmem:[#allocation25_spill] sm:$0xff] %v3720_v20  ;;  %v1282_v29 = vrot.slane %v3643_v62, %v3057_v12  ;;  %v1298_v28 = vrot.slane %v3648_v18, %v3057_v12  ;;  %v1314_v25 = vrot.slane %v3674_v47, %v3057_v12 }
 0x2a9   :  { %v1330_v21 = vrot.slane %v3686_v11, %v3057_v12  ;;  %v4244_v58 = vrot.slane %v3587_v30, %v3051_v9  ;;  %v4245_v42 = vrot.slane %v3590_v32, %v3051_v9 }
 0x337   :  { %v1013_v59 = vpop.f32.mrf.mxu0 }
 0x338   :  { %v1132_v18 = vpop.f32.mrf.mxu1  ;;  %v1347_v11 = vmul.f32 %v1270_v56, %v1013_v59  ;;  %v1351_v55 = vmul.f32 %v1286_v45, %v1013_v59  ;;  %v1355_v46 = vmul.f32 %v1302_v19, %v1013_v59  ;;  %v1359_v4 = vmul.f32 %v1318_v1, %v1013_v59 }
 0x339   :  { %v1015_v63 = vpop.f32.mrf.mxu0  ;;  %v1349_v23 = vmul.f32 %v1278_v3, %v1132_v18  ;;  %v1353_v51 = vmul.f32 %v1294_v60, %v1132_v18  ;;  %v1357_v17 = vmul.f32 %v1310_v54, %v1132_v18  ;;  %v1361_v31 = vmul.f32 %v1326_v40, %v1132_v18 }
 0x33a   :  { %v1134_v24 = vpop.f32.mrf.mxu1  ;;  %v4246_v56 = vrot.slane %v3618_v34, %v3051_v9  ;;  %v4247_v59 = vrot.slane %v3622_v14, %v3051_v9  ;;  %v1348_v54 = vmul.f32 %v1274_v0, %v1015_v63  ;;  %v4248_v40 = vrot.slane %v3587_v30, %v3060_v13 }
 0x33b   :  { %v1019_v44 = vpop.f32.mrf.mxu0  ;;  %v1356_v27 = vmul.f32 %v1306_v41, %v1015_v63  ;;  %v1360_v26 = vmul.f32 %v1322_v33, %v1015_v63  ;;  %v1350_v2 = vmul.f32 %v1282_v29, %v1134_v24  ;;  %v1358_v0 = vmul.f32 %v1314_v25, %v1134_v24 }
 0x33c   :  { %v1505_v62 = vmul.f32 %v4244_v58, %v1019_v44  ;;  %v1509_v43 = vmul.f32 %v4245_v42, %v1019_v44  ;;  %v1513_v45 = vmul.f32 %v4246_v56, %v1019_v44  ;;  %v1517_v3 = vmul.f32 %v4247_v59, %v1019_v44  ;;  %v1138_v1 = vpop.f32.mrf.mxu1 }
 0x33d   :  { %v1507_v60 = vmul.f32 %v4248_v40, %v1138_v1  ;;  %v4249_v58 = vrot.slane %v3590_v32, %v3060_v13  ;;  %v4250_v42 = vrot.slane %v3618_v34, %v3060_v13  ;;  %v1021_v47 = vpop.f32.mrf.mxu0  ;;  %v1352_v56 = vmul.f32 %v1290_v61, %v1015_v63 }
 0x33e   :  { %v1140_v44 = vpop.f32.mrf.mxu1  ;;  %v1354_v59 = vmul.f32 %v1298_v28, %v1134_v24  ;;  %v1362_v22 = vmul.f32 %v1330_v21, %v1134_v24  ;;  %v4251_v40 = vrot.slane %v3622_v14, %v3060_v13  ;;  %v1521_v39 = vadd.f32 %v1505_v62, %v1347_v11 }
 0x33f   :  { %v1511_v19 = vmul.f32 %v4249_v58, %v1138_v1  ;;  %v1515_v18 = vmul.f32 %v4250_v42, %v1138_v1  ;;  %v1025_v48 = vpop.f32.mrf.mxu0  ;;  %v1525_v58 = vadd.f32 %v1509_v43, %v1351_v55  ;;  %v1529_v38 = vadd.f32 %v1513_v45, %v1355_v46 }
 0x340   :  { %v1519_v49 = vmul.f32 %v4251_v40, %v1138_v1  ;;  %v1533_v7 = vadd.f32 %v1517_v3, %v1359_v4  ;;  %v1144_v6 = vpop.f32.mrf.mxu1  ;;  %v1523_v42 = vadd.f32 %v1507_v60, %v1349_v23  ;;  %v4252_v41 = vrot.slane %v3587_v30, %v3054_v10 }
 0x341   :  { %v1527_v20 = vadd.f32 %v1511_v19, %v1353_v51  ;;  %v1531_v61 = vadd.f32 %v1515_v18, %v1357_v17  ;;  %v1027_v28 = vpop.f32.mrf.mxu0  ;;  %v4253_v24 = vrot.slane %v3590_v32, %v3054_v10  ;;  %v4254_v21 = vrot.slane %v3618_v34, %v3054_v10 }
 0x342   :  { %v1506_v63 = vmul.f32 %v4252_v41, %v1021_v47  ;;  %v4255_v43 = vrot.slane %v3622_v14, %v3054_v10  ;;  %v4256_v17 = vrot.slane %v3587_v30, %v3057_v12  ;;  %v1146_v4 = vpop.f32.mrf.mxu1  ;;  %v1535_v46 = vadd.f32 %v1519_v49, %v1361_v31 }
 0x343   :  { %v1510_v25 = vmul.f32 %v4253_v24, %v1021_v47  ;;  %v1514_v29 = vmul.f32 %v4254_v21, %v1021_v47  ;;  %v4257_v51 = vrot.slane %v3590_v32, %v3057_v12  ;;  %v4258_v62 = vrot.slane %v3618_v34, %v3057_v12  ;;  %v1031_v21 = vpop.f32.mrf.mxu0 }
 0x344   :  { %v1518_v55 = vmul.f32 %v4255_v43, %v1021_v47  ;;  %v1508_v23 = vmul.f32 %v4256_v17, %v1140_v44  ;;  %v4259_v45 = vrot.slane %v3622_v14, %v3057_v12  ;;  %v4260_v47 = vrot.slane %v3519_v36, %v3051_v9 }
 0x345   :  { %v1512_v33 = vmul.f32 %v4257_v51, %v1140_v44  ;;  %v1516_v11 = vmul.f32 %v4258_v62, %v1140_v44  ;;  %v4261_v30 = vrot.slane %v3530_v8, %v3051_v9  ;;  %v4262_v32 = vrot.slane %v3552_v50, %v3051_v9 }
 0x346   :  { %v1520_v3 = vmul.f32 %v4259_v45, %v1140_v44  ;;  %v1663_v1 = vmul.f32 %v4260_v47, %v1025_v48  ;;  %v4263_v34 = vrot.slane %v3560_v5, %v3051_v9  ;;  %v1522_v19 = vadd.f32 %v1506_v63, %v1348_v54  ;;  %v1150_v45 = vpop.f32.mrf.mxu1 }
 0x347   :  { %v1667_v31 = vmul.f32 %v4261_v30, %v1025_v48  ;;  %v1671_v49 = vmul.f32 %v4262_v32, %v1025_v48  ;;  %v4264_v14 = vrot.slane %v3519_v36, %v3060_v13  ;;  %v4265_v44 = vrot.slane %v3530_v8, %v3060_v13 }
 0x348   :  { %v1675_v60 = vmul.f32 %v4263_v34, %v1025_v48  ;;  %v4266_v41 = vrot.slane %v3552_v50, %v3060_v13  ;;  %v1526_v43 = vadd.f32 %v1510_v25, %v1352_v56  ;;  %v1530_v17 = vadd.f32 %v1514_v29, %v1356_v27 }
 0x349   :  { %v1665_v18 = vmul.f32 %v4264_v14, %v1144_v6  ;;  %v1669_v40 = vmul.f32 %v4265_v44, %v1144_v6  ;;  %v1534_v51 = vadd.f32 %v1518_v55, %v1360_v26  ;;  %v1524_v62 = vadd.f32 %v1508_v23, %v1350_v2  ;;  %v1033_v2 = vpop.f32.mrf.mxu0 }
 0x34a   :  { %v1673_v24 = vmul.f32 %v4266_v41, %v1144_v6  ;;  %v1528_v48 = vadd.f32 %v1512_v33, %v1354_v59  ;;  %v1532_v54 = vadd.f32 %v1516_v11, %v1358_v0  ;;  %v1536_v63 = vadd.f32 %v1520_v3, %v1362_v22  ;;  %v1152_v0 = vpop.f32.mrf.mxu1 }
 0x34b   :  { %v4267_v47 = vrot.slane %v3560_v5, %v3060_v13  ;;  %v1679_v32 = vadd.f32 %v1663_v1, %v1521_v39  ;;  %v1683_v34 = vadd.f32 %v1667_v31, %v1525_v58  ;;  %v1687_v14 = vadd.f32 %v1671_v49, %v1529_v38 }
 0x34c   :  { %v1691_v44 = vadd.f32 %v1675_v60, %v1533_v7  ;;  %v1681_v37 = vadd.f32 %v1665_v18, %v1523_v42  ;;  %v1685_v35 = vadd.f32 %v1669_v40, %v1527_v20  ;;  %v1689_v41 = vadd.f32 %v1673_v24, %v1531_v61  ;;  %v1037_v40 = vpop.f32.mrf.mxu0 }
 0x34d   :  { %v1677_v30 = vmul.f32 %v4267_v47, %v1144_v6  ;;  %v4268_v27 = vrot.slane %v3519_v36, %v3054_v10  ;;  %v4269_v56 = vrot.slane %v3530_v8, %v3054_v10  ;;  %v4270_v59 = vrot.slane %v3552_v50, %v3054_v10 }
 0x34e   :  { %v4271_v38 = vrot.slane %v3560_v5, %v3054_v10  ;;  %v4272_v39 = vrot.slane %v3519_v36, %v3057_v12  ;;  %v4273_v42 = vrot.slane %v3530_v8, %v3057_v12  ;;  %v4274_v25 = vrot.slane %v3552_v50, %v3057_v12 }
 0x34f   :  { %v1664_v26 = vmul.f32 %v4268_v27, %v1027_v28  ;;  %v1668_v22 = vmul.f32 %v4269_v56, %v1027_v28  ;;  %v1672_v6 = vmul.f32 %v4270_v59, %v1027_v28  ;;  %v1693_v58 = vadd.f32 %v1677_v30, %v1535_v46  ;;  %v1156_v56 = vpop.f32.mrf.mxu1 }
 0x350   :  { %v1676_v7 = vmul.f32 %v4271_v38, %v1027_v28  ;;  %v1666_v20 = vmul.f32 %v4272_v39, %v1146_v4  ;;  %v1670_v61 = vmul.f32 %v4273_v42, %v1146_v4  ;;  %v1674_v29 = vmul.f32 %v4274_v25, %v1146_v4 }
 0x351   :  { %v4275_v55 = vrot.slane %v3560_v5, %v3057_v12  ;;  %v4276_v28 = vrot.slane %v3479_v52, %v3051_v9  ;;  %v4277_v36 = vrot.slane %v3482_v53, %v3051_v9  ;;  %v4278_v8 = vrot.slane %v3508_v15, %v3051_v9 }
 0x352   :  { %v4279_v50 = vrot.slane %v3512_v16, %v3051_v9  ;;  %v1680_v1 = vadd.f32 %v1664_v26, %v1522_v19  ;;  %v4280_v5 = vrot.slane %v3479_v52, %v3060_v13  ;;  %v4281_v31 = vrot.slane %v3482_v53, %v3060_v13 }
 0x353   :  { %v1678_v23 = vmul.f32 %v4275_v55, %v1146_v4  ;;  %v1821_v33 = vmul.f32 %v4276_v28, %v1031_v21  ;;  %v1825_v46 = vmul.f32 %v4277_v36, %v1031_v21  ;;  %v1829_v11 = vmul.f32 %v4278_v8, %v1031_v21 }
 0x354   :  { %v1833_v3 = vmul.f32 %v4279_v50, %v1031_v21  ;;  %v1823_v4 = vmul.f32 %v4280_v5, %v1150_v45  ;;  %v1827_v49 = vmul.f32 %v4281_v31, %v1150_v45  ;;  %v4282_v60 = vrot.slane %v3508_v15, %v3060_v13 }
 0x355   :  { %v1684_v24 = vadd.f32 %v1668_v22, %v1526_v43  ;;  %v1688_v47 = vadd.f32 %v1672_v6, %v1530_v17  ;;  %v1692_v30 = vadd.f32 %v1676_v7, %v1534_v51  ;;  %v1682_v27 = vadd.f32 %v1666_v20, %v1524_v62  ;;  %v1039_v51 = vpop.f32.mrf.mxu0 }
 0x356   :  { %v1831_v18 = vmul.f32 %v4282_v60, %v1150_v45  ;;  %v1686_v21 = vadd.f32 %v1670_v61, %v1528_v48  ;;  %v1690_v19 = vadd.f32 %v1674_v29, %v1532_v54  ;;  %v1694_v26 = vadd.f32 %v1678_v23, %v1536_v63  ;;  %v4295_v23 = vld [vmem:[#allocation24_spill] sm:$0xff] }
 0x357   :  { %v4283_v59 = vrot.slane %v3512_v16, %v3060_v13  ;;  %v1837_v39 = vadd.f32 %v1821_v33, %v1679_v32  ;;  %v1841_v42 = vadd.f32 %v1825_v46, %v1683_v34  ;;  %v1845_v25 = vadd.f32 %v1829_v11, %v1687_v14  ;;  %v1158_v34 = vpop.f32.mrf.mxu1  ;;  %v4297_v46 = vld [vmem:[#allocation25_spill] sm:$0xff] }
 0x358   :  { %v1849_v55 = vadd.f32 %v1833_v3, %v1691_v44  ;;  %v1839_v28 = vadd.f32 %v1823_v4, %v1681_v37  ;;  %v1843_v36 = vadd.f32 %v1827_v49, %v1685_v35  ;;  %v1847_v8 = vadd.f32 %v1831_v18, %v1689_v41  ;;  %v1043_v49 = vpop.f32.mrf.mxu0 }
 0x359   :  { %v1835_v38 = vmul.f32 %v4283_v59, %v1150_v45  ;;  %v4284_v43 = vrot.slane %v3479_v52, %v3054_v10  ;;  %v4285_v62 = vrot.slane %v3482_v53, %v3054_v10  ;;  %v4286_v54 = vrot.slane %v3508_v15, %v3054_v10 }
 0x35a   :  { %v4287_v63 = vrot.slane %v3512_v16, %v3054_v10  ;;  %v4288_v37 = vrot.slane %v3479_v52, %v3057_v12  ;;  %v4289_v44 = vrot.slane %v3482_v53, %v3057_v12  ;;  %v4290_v22 = vrot.slane %v3508_v15, %v3057_v12  ;;  %v4293_v52 = vld [vmem:[#allocation23_spill] sm:$0xff] }
 0x35b   :  { %v1822_v17 = vmul.f32 %v4284_v43, %v1033_v2  ;;  %v1826_v48 = vmul.f32 %v4285_v62, %v1033_v2  ;;  %v1830_v45 = vmul.f32 %v4286_v54, %v1033_v2  ;;  %v1851_v14 = vadd.f32 %v1835_v38, %v1693_v58  ;;  %v1162_v43 = vpop.f32.mrf.mxu1 }
 0x35c   :  { %v1834_v32 = vmul.f32 %v4287_v63, %v1033_v2  ;;  %v1824_v35 = vmul.f32 %v4288_v37, %v1152_v0  ;;  %v1828_v41 = vmul.f32 %v4289_v44, %v1152_v0  ;;  %v1832_v6 = vmul.f32 %v4290_v22, %v1152_v0 }
 0x35d   :  { %v4291_v7 = vrot.slane %v3512_v16, %v3057_v12  ;;  %v4292_v2 = vrot.slane %v3677_v57, %v3051_v9  ;;  %v4294_v29 = vrot.slane %v4293_v52, %v3051_v9  ;;  %v4296_v53 = vrot.slane %v4295_v23, %v3051_v9 }
 0x35e   :  { %v4298_v15 = vrot.slane %v4297_v46, %v3051_v9  ;;  %v1838_v50 = vadd.f32 %v1822_v17, %v1680_v1  ;;  %v4299_v16 = vrot.slane %v3677_v57, %v3060_v13  ;;  %v4300_v3 = vrot.slane %v4293_v52, %v3060_v13 }
 0x35f   :  { %v1836_v20 = vmul.f32 %v4291_v7, %v1152_v0  ;;  %v1979_v61 = vmul.f32 %v4292_v2, %v1037_v40  ;;  %v1983_v58 = vmul.f32 %v4294_v29, %v1037_v40  ;;  %v1987_v33 = vmul.f32 %v4296_v53, %v1037_v40  ;;  %v4317_v53 = vld [vmem:[#allocation22_spill] sm:$0xff] }
 0x360   :  { %v1991_v11 = vmul.f32 %v4298_v15, %v1037_v40  ;;  %v1981_v0 = vmul.f32 %v4299_v16, %v1156_v56  ;;  %v1985_v5 = vmul.f32 %v4300_v3, %v1156_v56  ;;  %v4301_v4 = vrot.slane %v4295_v23, %v3060_v13 }
 0x361   :  { %v1842_v60 = vadd.f32 %v1826_v48, %v1684_v24  ;;  %v1846_v18 = vadd.f32 %v1830_v45, %v1688_v47  ;;  %v1850_v59 = vadd.f32 %v1834_v32, %v1692_v30  ;;  %v1840_v38 = vadd.f32 %v1824_v35, %v1682_v27  ;;  %v1045_v30 = vpop.f32.mrf.mxu0 }
 0x362   :  { %v1989_v31 = vmul.f32 %v4301_v4, %v1156_v56  ;;  %v1844_v40 = vadd.f32 %v1828_v41, %v1686_v21  ;;  %v1848_v1 = vadd.f32 %v1832_v6, %v1690_v19  ;;  %v1852_v17 = vadd.f32 %v1836_v20, %v1694_v26  ;;  %v4311_v41 = vld [vmem:[#allocation19_spill] sm:$0xff] }
 0x363   :  { %v4302_v62 = vrot.slane %v4297_v46, %v3060_v13  ;;  %v1995_v63 = vadd.f32 %v1979_v61, %v1837_v39  ;;  %v1999_v37 = vadd.f32 %v1983_v58, %v1841_v42  ;;  %v2003_v44 = vadd.f32 %v1987_v33, %v1845_v25  ;;  %v4315_v61 = vld [vmem:[#allocation21_spill] sm:$0xff] }
 0x364   :  { %v2007_v22 = vadd.f32 %v1991_v11, %v1849_v55  ;;  %v1997_v7 = vadd.f32 %v1981_v0, %v1839_v28  ;;  %v2001_v2 = vadd.f32 %v1985_v5, %v1843_v36  ;;  %v2005_v29 = vadd.f32 %v1989_v31, %v1847_v8  ;;  %v1164_v55 = vpop.f32.mrf.mxu1  ;;  %v1049_v5 = vpop.f32.mrf.mxu0 }
 0x365   :  { %v1993_v54 = vmul.f32 %v4302_v62, %v1156_v56  ;;  %v4303_v24 = vrot.slane %v3677_v57, %v3054_v10  ;;  %v4304_v27 = vrot.slane %v4293_v52, %v3054_v10  ;;  %v4305_v19 = vrot.slane %v4295_v23, %v3054_v10 }
 0x366   :  { %v4306_v26 = vrot.slane %v4297_v46, %v3054_v10  ;;  %v4307_v42 = vrot.slane %v3677_v57, %v3057_v12  ;;  %v4308_v36 = vrot.slane %v4293_v52, %v3057_v12  ;;  %v4309_v48 = vrot.slane %v4295_v23, %v3057_v12  ;;  %v4313_v57 = vld [vmem:[#allocation20_spill] sm:$0xff] }
 0x367   :  { %v1980_v47 = vmul.f32 %v4303_v24, %v1039_v51  ;;  %v1984_v21 = vmul.f32 %v4304_v27, %v1039_v51  ;;  %v1988_v56 = vmul.f32 %v4305_v19, %v1039_v51  ;;  %v2009_v28 = vadd.f32 %v1993_v54, %v1851_v14  ;;  %v1168_v24 = vpop.f32.mrf.mxu1 }
 0x368   :  { %v1992_v39 = vmul.f32 %v4306_v26, %v1039_v51  ;;  %v1982_v25 = vmul.f32 %v4307_v42, %v1158_v34  ;;  %v1986_v8 = vmul.f32 %v4308_v36, %v1158_v34  ;;  %v1990_v45 = vmul.f32 %v4309_v48, %v1158_v34 }
 0x369   :  { %v4310_v32 = vrot.slane %v4297_v46, %v3057_v12  ;;  %v4312_v51 = vrot.slane %v4311_v41, %v3051_v9  ;;  %v4314_v20 = vrot.slane %v4313_v57, %v3051_v9  ;;  %v4316_v52 = vrot.slane %v4315_v61, %v3051_v9 }
 0x36a   :  { %v4318_v23 = vrot.slane %v4317_v53, %v3051_v9  ;;  %v1996_v15 = vadd.f32 %v1980_v47, %v1838_v50  ;;  %v4320_v11 = vrot.slane %v4313_v57, %v3060_v13  ;;  %v4321_v0 = vrot.slane %v4315_v61, %v3060_v13 }
 0x36b   :  { %v1994_v35 = vmul.f32 %v4310_v32, %v1158_v34  ;;  %v2137_v6 = vmul.f32 %v4312_v51, %v1043_v49  ;;  %v2141_v14 = vmul.f32 %v4314_v20, %v1043_v49  ;;  %v2145_v58 = vmul.f32 %v4316_v52, %v1043_v49  ;;  %v4337_v52 = vld [vmem:[#allocation18_spill] sm:$0xff] }
 0x36c   :  { %v2149_v33 = vmul.f32 %v4318_v23, %v1043_v49  ;;  %v4319_v34 = vrot.slane %v4311_v41, %v3060_v13  ;;  %v2143_v16 = vmul.f32 %v4320_v11, %v1162_v43  ;;  %v2147_v3 = vmul.f32 %v4321_v0, %v1162_v43 }
 0x36d   :  { %v2000_v4 = vadd.f32 %v1984_v21, %v1842_v60  ;;  %v2004_v31 = vadd.f32 %v1988_v56, %v1846_v18  ;;  %v2008_v62 = vadd.f32 %v1992_v39, %v1850_v59  ;;  %v1998_v54 = vadd.f32 %v1982_v25, %v1840_v38  ;;  %v1051_v59 = vpop.f32.mrf.mxu0 }
 0x36e   :  { %v2139_v46 = vmul.f32 %v4319_v34, %v1162_v43  ;;  %v2002_v49 = vadd.f32 %v1986_v8, %v1844_v40  ;;  %v2006_v50 = vadd.f32 %v1990_v45, %v1848_v1  ;;  %v2010_v47 = vadd.f32 %v1994_v35, %v1852_v17  ;;  %v4331_v8 = vld [vmem:[#allocation15_spill] sm:$0xff]  ;;  %v4333_v35 = vld [vmem:[#allocation16_spill] sm:$0xff] }
 0x36f   :  { %v4322_v27 = vrot.slane %v4317_v53, %v3060_v13  ;;  %v2153_v26 = vadd.f32 %v2137_v6, %v1995_v63  ;;  %v2157_v42 = vadd.f32 %v2141_v14, %v1999_v37  ;;  %v2161_v36 = vadd.f32 %v2145_v58, %v2003_v44  ;;  %v4335_v6 = vld [vmem:[#allocation17_spill] sm:$0xff] }
 0x370   :  { %v2165_v48 = vadd.f32 %v2149_v33, %v2007_v22  ;;  %v2155_v32 = vadd.f32 %v2139_v46, %v1997_v7  ;;  %v2159_v51 = vadd.f32 %v2143_v16, %v2001_v2  ;;  %v2163_v20 = vadd.f32 %v2147_v3, %v2005_v29  ;;  %v1170_v22 = vpop.f32.mrf.mxu1  ;;  %v1055_v16 = vpop.f32.mrf.mxu0 }
 0x371   :  { %v2151_v19 = vmul.f32 %v4322_v27, %v1162_v43  ;;  %v4323_v60 = vrot.slane %v4311_v41, %v3054_v10  ;;  %v4324_v38 = vrot.slane %v4313_v57, %v3054_v10  ;;  %v4325_v1 = vrot.slane %v4315_v61, %v3054_v10 }
 0x372   :  { %v4326_v17 = vrot.slane %v4317_v53, %v3054_v10  ;;  %v4327_v37 = vrot.slane %v4311_v41, %v3057_v12  ;;  %v4328_v2 = vrot.slane %v4313_v57, %v3057_v12  ;;  %v4329_v21 = vrot.slane %v4315_v61, %v3057_v12 }
 0x373   :  { %v2138_v18 = vmul.f32 %v4323_v60, %v1045_v30  ;;  %v2142_v40 = vmul.f32 %v4324_v38, %v1045_v30  ;;  %v2146_v43 = vmul.f32 %v4325_v1, %v1045_v30  ;;  %v2167_v7 = vadd.f32 %v2151_v19, %v2009_v28  ;;  %v1174_v60 = vpop.f32.mrf.mxu1 }
 0x374   :  { %v2150_v63 = vmul.f32 %v4326_v17, %v1045_v30  ;;  %v2140_v44 = vmul.f32 %v4327_v37, %v1164_v55  ;;  %v2144_v29 = vmul.f32 %v4328_v2, %v1164_v55  ;;  %v2148_v56 = vmul.f32 %v4329_v21, %v1164_v55 }
 0x375   :  { %v4330_v39 = vrot.slane %v4317_v53, %v3057_v12  ;;  %v4332_v30 = vrot.slane %v4331_v8, %v3051_v9  ;;  %v4334_v41 = vrot.slane %v4333_v35, %v3051_v9  ;;  %v4336_v57 = vrot.slane %v4335_v6, %v3051_v9 }
 0x376   :  { %v4338_v61 = vrot.slane %v4337_v52, %v3051_v9  ;;  %v2154_v23 = vadd.f32 %v2138_v18, %v1996_v15  ;;  %v4340_v33 = vrot.slane %v4333_v35, %v3060_v13  ;;  %v4341_v46 = vrot.slane %v4335_v6, %v3060_v13 }
 0x377   :  { %v2152_v25 = vmul.f32 %v4330_v39, %v1164_v55  ;;  %v2295_v45 = vmul.f32 %v4332_v30, %v1049_v5  ;;  %v2299_v28 = vmul.f32 %v4334_v41, %v1049_v5  ;;  %v2303_v14 = vmul.f32 %v4336_v57, %v1049_v5  ;;  %v4357_v57 = vld [vmem:[#allocation14_spill] sm:$0xff] }
 0x378   :  { %v2307_v58 = vmul.f32 %v4338_v61, %v1049_v5  ;;  %v4339_v55 = vrot.slane %v4331_v8, %v3060_v13  ;;  %v2301_v34 = vmul.f32 %v4340_v33, %v1168_v24  ;;  %v2305_v11 = vmul.f32 %v4341_v46, %v1168_v24 }
 0x379   :  { %v2158_v0 = vadd.f32 %v2142_v40, %v2000_v4  ;;  %v2162_v3 = vadd.f32 %v2146_v43, %v2004_v31  ;;  %v2166_v27 = vadd.f32 %v2150_v63, %v2008_v62  ;;  %v2156_v19 = vadd.f32 %v2140_v44, %v1998_v54  ;;  %v1057_v62 = vpop.f32.mrf.mxu0 }
 0x37a   :  { %v2297_v53 = vmul.f32 %v4339_v55, %v1168_v24  ;;  %v2160_v5 = vadd.f32 %v2144_v29, %v2002_v49  ;;  %v2164_v15 = vadd.f32 %v2148_v56, %v2006_v50  ;;  %v2168_v18 = vadd.f32 %v2152_v25, %v2010_v47  ;;  %v4351_v29 = vld [vmem:[#allocation11_spill] sm:$0xff]  ;;  %v4353_v25 = vld [vmem:[#allocation12_spill] sm:$0xff] }
 0x37b   :  { %v4342_v38 = vrot.slane %v4337_v52, %v3060_v13  ;;  %v2311_v17 = vadd.f32 %v2295_v45, %v2153_v26  ;;  %v2315_v37 = vadd.f32 %v2299_v28, %v2157_v42  ;;  %v2319_v2 = vadd.f32 %v2303_v14, %v2161_v36  ;;  %v4355_v45 = vld [vmem:[#allocation13_spill] sm:$0xff] }
 0x37c   :  { %v2323_v21 = vadd.f32 %v2307_v58, %v2165_v48  ;;  %v4042_v39 = vadd.f32 %v2297_v53, %v2155_v32  ;;  %v2317_v30 = vadd.f32 %v2301_v34, %v2159_v51  ;;  %v2321_v41 = vadd.f32 %v2305_v11, %v2163_v20  ;;  %v1176_v48 = vpop.f32.mrf.mxu1  ;;  %v1061_v34 = vpop.f32.mrf.mxu0 }
 0x37d   :  { %v2309_v1 = vmul.f32 %v4342_v38, %v1168_v24  ;;  %v4343_v4 = vrot.slane %v4331_v8, %v3054_v10  ;;  %v4344_v54 = vrot.slane %v4333_v35, %v3054_v10  ;;  %v4345_v24 = vrot.slane %v4335_v6, %v3054_v10 }
 0x37e   :  { %v4346_v47 = vrot.slane %v4337_v52, %v3054_v10  ;;  %v4347_v42 = vrot.slane %v4331_v8, %v3057_v12  ;;  %v4348_v51 = vrot.slane %v4333_v35, %v3057_v12  ;;  %v4349_v40 = vrot.slane %v4335_v6, %v3057_v12 }
 0x37f   :  { %v2296_v31 = vmul.f32 %v4343_v4, %v1051_v59  ;;  %v2300_v49 = vmul.f32 %v4344_v54, %v1051_v59  ;;  %v2304_v50 = vmul.f32 %v4345_v24, %v1051_v59  ;;  %v2325_v32 = vadd.f32 %v2309_v1, %v2167_v7 }
 0x380   :  { %v2308_v26 = vmul.f32 %v4346_v47, %v1051_v59  ;;  %v2298_v36 = vmul.f32 %v4347_v42, %v1170_v22  ;;  %v2302_v20 = vmul.f32 %v4348_v51, %v1170_v22  ;;  %v2306_v43 = vmul.f32 %v4349_v40, %v1170_v22 }
 0x381   :  { %v4350_v63 = vrot.slane %v4337_v52, %v3057_v12  ;;  %v4352_v59 = vrot.slane %v4351_v29, %v3051_v9  ;;  %v4354_v8 = vrot.slane %v4353_v25, %v3051_v9  ;;  %v4356_v35 = vrot.slane %v4355_v45, %v3051_v9 }
 0x382   :  { %v4358_v6 = vrot.slane %v4357_v57, %v3051_v9  ;;  %v4080_v61 = vadd.f32 %v2296_v31, %v2154_v23  ;;  %v4360_v58 = vrot.slane %v4355_v45, %v3060_v13  ;;  %v4361_v53 = vrot.slane %v4357_v57, %v3060_v13 }
 0x383   :  { %v2310_v44 = vmul.f32 %v4350_v63, %v1170_v22  ;;  %v2453_v56 = vmul.f32 %v4352_v59, %v1055_v16  ;;  %v2457_v7 = vmul.f32 %v4354_v8, %v1055_v16  ;;  %v2461_v28 = vmul.f32 %v4356_v35, %v1055_v16 }
 0x384   :  { %v2465_v14 = vmul.f32 %v4358_v6, %v1055_v16  ;;  %v4359_v22 = vrot.slane %v4353_v25, %v3060_v13  ;;  %v2463_v55 = vmul.f32 %v4360_v58, %v1174_v60  ;;  %v2467_v33 = vmul.f32 %v4361_v53, %v1174_v60  ;;  %v1180_v16 = vpop.f32.mrf.mxu1 }
 0x385   :  { %v2316_v46 = vadd.f32 %v2300_v49, %v2158_v0  ;;  %v2320_v11 = vadd.f32 %v2304_v50, %v2162_v3  ;;  %v2324_v38 = vadd.f32 %v2308_v26, %v2166_v27  ;;  %v2314_v1 = vadd.f32 %v2298_v36, %v2156_v19  ;;  %v1063_v27 = vpop.f32.mrf.mxu0 }
 0x386   :  { %v2459_v52 = vmul.f32 %v4359_v22, %v1174_v60  ;;  %v2318_v23 = vadd.f32 %v2302_v20, %v2160_v5  ;;  %v2322_v4 = vadd.f32 %v2306_v43, %v2164_v15  ;;  %v2326_v31 = vadd.f32 %v2310_v44, %v2168_v18  ;;  %v4373_v43 = vld [vmem:[#allocation8_spill] sm:$0xff] }
 0x387   :  { %v4362_v54 = vrot.slane %v4351_v29, %v3060_v13  ;;  %v4094_v47 = vadd.f32 %v2453_v56, %v2311_v17  ;;  %v2473_v42 = vadd.f32 %v2457_v7, %v2315_v37  ;;  %v2477_v51 = vadd.f32 %v2461_v28, %v2319_v2  ;;  %v4375_v7 = vld [vmem:[#allocation9_spill] sm:$0xff]  ;;  %v4377_v28 = vld [vmem:[#allocation10_spill] sm:$0xff] }
 0x388   :  { %v2481_v40 = vadd.f32 %v2465_v14, %v2323_v21  ;;  %v2475_v63 = vadd.f32 %v2459_v52, %v2317_v30  ;;  %v2479_v59 = vadd.f32 %v2463_v55, %v2321_v41  ;;  %v2483_v8 = vadd.f32 %v2467_v33, %v2325_v32  ;;  %v1182_v21 = vpop.f32.mrf.mxu1  ;;  %v4371_v32 = vld [vmem:[#allocation7_spill] sm:$0xff] }
 0x389   :  { %v2455_v24 = vmul.f32 %v4362_v54, %v1174_v60  ;;  %v4363_v0 = vrot.slane %v4351_v29, %v3054_v10  ;;  %v4364_v19 = vrot.slane %v4353_v25, %v3054_v10  ;;  %v4365_v60 = vrot.slane %v4355_v45, %v3054_v10 }
 0x38a   :  { %v4366_v18 = vrot.slane %v4357_v57, %v3054_v10  ;;  %v4367_v37 = vrot.slane %v4357_v57, %v3057_v12  ;;  %v4368_v30 = vrot.slane %v4351_v29, %v3057_v12  ;;  %v4369_v49 = vrot.slane %v4353_v25, %v3057_v12 }
 0x38b   :  { %v2454_v3 = vmul.f32 %v4363_v0, %v1057_v62  ;;  %v2458_v5 = vmul.f32 %v4364_v19, %v1057_v62  ;;  %v2462_v15 = vmul.f32 %v4365_v60, %v1057_v62  ;;  %v4370_v26 = vrot.slane %v4355_v45, %v3057_v12 }
 0x38c   :  { %v2466_v17 = vmul.f32 %v4366_v18, %v1057_v62  ;;  %v2468_v2 = vmul.f32 %v4367_v37, %v1176_v48  ;;  %v2456_v41 = vmul.f32 %v4368_v30, %v1176_v48  ;;  %v2460_v50 = vmul.f32 %v4369_v49, %v1176_v48 }
 0x38d   :  { %v2464_v36 = vmul.f32 %v4370_v26, %v1176_v48  ;;  %v4372_v62 = vrot.slane %v4371_v32, %v3051_v9  ;;  %v4374_v44 = vrot.slane %v4373_v43, %v3051_v9  ;;  %v4376_v29 = vrot.slane %v4375_v7, %v3051_v9 }
 0x38e   :  { %v4378_v25 = vrot.slane %v4377_v28, %v3051_v9  ;;  %v4379_v45 = vrot.slane %v4377_v28, %v3054_v10  ;;  %v4380_v6 = vrot.slane %v4371_v32, %v3060_v13  ;;  %v4381_v22 = vrot.slane %v4373_v43, %v3060_v13 }
 0x38f   :  { %v2611_v20 = vmul.f32 %v4372_v62, %v1061_v34  ;;  %v2615_v56 = vmul.f32 %v4374_v44, %v1061_v34  ;;  %v2619_v35 = vmul.f32 %v4376_v29, %v1061_v34  ;;  %v4382_v58 = vrot.slane %v4377_v28, %v3060_v13 }
 0x390   :  { %v2623_v57 = vmul.f32 %v4378_v25, %v1061_v34  ;;  %v2624_v48 = vmul.f32 %v4379_v45, %v1063_v27  ;;  %v2613_v14 = vmul.f32 %v4380_v6, %v1180_v16  ;;  %v2617_v52 = vmul.f32 %v4381_v22, %v1180_v16 }
 0x391   :  { %v2625_v55 = vmul.f32 %v4382_v58, %v1180_v16  ;;  %v4383_v9 = vrot.slane %v4377_v28, %v3057_v12  ;;  %v4384_v33 = vrot.slane %v4375_v7, %v3054_v10  ;;  %v4385_v54 = vrot.slane %v4375_v7, %v3057_v12 }
 0x392   :  { %v2482_v19 = vadd.f32 %v2466_v17, %v2324_v38  ;;  %v2484_v60 = vadd.f32 %v2468_v2, %v2326_v31  ;;  %v4386_v18 = vrot.slane %v4375_v7, %v3060_v13  ;;  %v4387_v30 = vrot.slane %v4371_v32, %v3054_v10 }
 0x393   :  { %v2626_v53 = vmul.f32 %v4383_v9, %v1182_v21  ;;  %v2620_v34 = vmul.f32 %v4384_v33, %v1063_v27  ;;  %v2622_v0 = vmul.f32 %v4385_v54, %v1182_v21  ;;  %v4388_v26 = vrot.slane %v4373_v43, %v3054_v10 }
 0x394   :  { %v2621_v37 = vmul.f32 %v4386_v18, %v1180_v16  ;;  %v2612_v49 = vmul.f32 %v4387_v30, %v1063_v27  ;;  %v4389_v44 = vrot.slane %v4373_v43, %v3057_v12  ;;  %v2640_v28 = vadd.f32 %v2624_v48, %v2482_v19 }
 0x395   :  { %v2616_v62 = vmul.f32 %v4388_v26, %v1063_v27  ;;  %v2642_v25 = vadd.f32 %v2626_v53, %v2484_v60  ;;  %v2478_v38 = vadd.f32 %v2462_v15, %v2320_v11  ;;  %v2480_v31 = vadd.f32 %v2464_v36, %v2322_v4 }
 0x396   :  { %v2618_v29 = vmul.f32 %v4389_v44, %v1182_v21  ;;  %v4390_v13 = vrot.slane %v4371_v32, %v3057_v12  ;;  %v2639_v17 = vadd.f32 %v2623_v57, %v2481_v40  ;;  %v2641_v2 = vadd.f32 %v2625_v55, %v2483_v8  ;;  %2678 = vmatprep.subr.mxu0 %v2640_v28 }
 0x397   :  { %v2474_v7 = vadd.f32 %v2458_v5, %v2316_v46  ;;  %2749 = vmatprep.subr.mxu1 %v2642_v25  ;;  %v2636_v45 = vadd.f32 %v2620_v34, %v2478_v38  ;;  %v2638_v10 = vadd.f32 %v2622_v0, %v2480_v31  ;;  %v2476_v27 = vadd.f32 %v2460_v50, %v2318_v23 }
 0x398   :  { %v2614_v16 = vmul.f32 %v4390_v13, %v1182_v21  ;;  %2679 = vmatpush1.msra.mxu0 %v2639_v17  ;;  %2750 = vmatpush1.msra.mxu1 %v2641_v2  ;;  %v2635_v43 = vadd.f32 %v2619_v35, %v2477_v51  ;;  %v2637_v48 = vadd.f32 %v2621_v37, %v2479_v59  ;;  %v2643_v59 = vld [vmem:[%s4184_s7] sm:$0xf]  ;;  %s2932_s7 = scalar_lea.vmem %s2813_s8, 256 }
 0x399   :  { %v2632_v6 = vadd.f32 %v2616_v62, %v2474_v7  ;;  %2680 = vmatprep.subr.mxu0 %v2636_v45  ;;  %2751 = vmatprep.subr.mxu1 %v2638_v10  ;;  %v2634_v11 = vadd.f32 %v2618_v29, %v2476_v27  ;;  %v2470_v4 = vadd.f32 %v2454_v3, %v4080_v61  ;;  %p2933_p0 = scmp.ne.s32.totalorder %s2813_s8, %s2932_s7  ;;  %p2938_p2 = scmp.lt.s32.totalorder %s2932_s7, %s2932_s7 }
 0x39a   :  { %v2472_v12 = vadd.f32 %v2456_v41, %v2314_v1  ;;  %v2471_v40 = vadd.f32 %v2455_v24, %v4042_v39  ;;  %2681 = vmatpush1.msra.mxu0 %v2635_v43  ;;  %2752 = vmatpush1.msra.mxu1 %v2637_v48  ;;  %v2631_v46 = vadd.f32 %v2615_v56, %v2473_v42  ;;  %v2648_v24 = vpop.permute.xlu1 %2647 }
 0x39b   :  { %v2633_v8 = vadd.f32 %v2617_v52, %v2475_v63  ;;  %2682 = vmatprep.subr.mxu0 %v2632_v6  ;;  %2753 = vmatprep.subr.mxu1 %v2634_v11  ;;  %v2628_v23 = vadd.f32 %v2612_v49, %v2470_v4  ;;  %v2627_v51 = vadd.f32 %v2611_v20, %v4094_v47  ;;  %p2939_p3 = por %p2938_p2, %p2937_p1 }
 0x39c   :  { %v2630_v5 = vadd.f32 %v2614_v16, %v2472_v12  ;;  %2683 = vmatpush1.msra.mxu0 %v2631_v46  ;;  %v2629_v61 = vadd.f32 %v2613_v14, %v2471_v40 }
 0x39d   :  { %2754 = vmatpush1.msra.mxu1 %v2633_v8  ;;  %2684 = vmatprep.subr.mxu0 %v2628_v23  ;;  %p2940_p4 = pnand %p2939_p3, %p2933_p0 }
 0x39e   :  { %2755 = vmatprep.subr.mxu1 %v2630_v5  ;;  %2685 = vmatpush1.msra.mxu0 %v2627_v51 }
 0x39f   :  { %2756 = vmatpush1.msra.mxu1 %v2629_v61  ;;  %2858 = vmatmul.mubr.msk.f32.vlgmr.msra.gmra.mxu0 %vm2650_vm12, %v2643_v59 }
 0x3a0   :  { %2859 = vmatmul.mubr.msk.f32.vlgmr.msra.gmra.mxu1 %vm2650_vm12, %v2643_v59 }
 0x45f   :  { %v2720_v39 = vpop.f32.mrf.mxu0 }
 0x460   :  { %v2791_v1 = vpop.f32.mrf.mxu1  ;;  %v2721_v47 = vadd.f32 %v2720_v39, %v2648_v24 }
 0x461   :  { %v2722_v42 = vpop.f32.mrf.mxu0  ;;  %v2792_v3 = vadd.f32 %v2791_v1, %v2648_v24 }
 0x462   :  { %v2793_v63 = vpop.f32.mrf.mxu1  ;;  %v2723_v15 = vadd.f32 %v2722_v42, %v2648_v24 }
 0x463   :  { %v2794_v21 = vadd.f32 %v2793_v63, %v2648_v24 }
 0x464   :  { %v2800_v41 = vcombine.low %v2721_v47, %v2723_v15 }
 0x465   :  { %v2801_v50 = vcombine.low %v2792_v3, %v2794_v21 }
 0x466   :  { %2804 = vst [vmem:[#allocation4] sm:$0xff] %v2800_v41 }
 0x467   :  { %2805 = vst [vmem:[#allocation4 + $0x8] sm:$0xff] %v2801_v50 }
 0x468   :  { %2943 = shalt.err (!%p2940_p4)
}
 0x469   :  { %2815 = dma.vmem_to_hbm [thread:$0]  %s2813_s8, 256, %s4186_s9, [#allocation5]  }
 0x46a   :  { %2952 = dma.done.wait [#allocation5], 256  }
 0x46b   :  { %2953 = vsyncadd [#allocation5], 4294967040 }
 0x46c   :  { %2819 = vsyncpa [#allocation5], 1 }

</bundles_post_ra>
